<compile_context>
chip_gen: v7x
topology: tpu7x:2x2x1
jax: 0.10.0
libtpu: 0.0.40
codegen_flags: <defaults>
</compile_context>

<pallas_src>
import functools

import jax
import jax.numpy as jnp
from jax import lax
from jax.experimental import pallas as pl
from jax.experimental.pallas import tpu as pltpu


def _rnn_kernel(x_ref, h0_ref, wih_ref, whh_ref, b_ref, wfc_ref, bfc_ref,
                out_ref, hout_ref, h_carry, pre_ref, act_ref,
                *, num_layers, chunk_len, batch_p):
    """Processes one seq-chunk of the stacked tanh-RNN + FC head.

    x_ref   : (chunk_len*batch_p, H) f32   embedded inputs, time-major flat
    h0_ref  : (L, batch_p, H)        f32   initial hidden state (resident)
    wih_ref : (L, H, H)              bf16  input->hidden weights (pre-transposed)
    whh_ref : (L, H, H)              bf16  hidden->hidden weights (pre-transposed)
    b_ref   : (L, 1, H)              f32   combined bias (b_ih + b_hh)
    wfc_ref : (H, O)                 bf16  fc weight (pre-transposed)
    bfc_ref : (1, O)                 f32
    out_ref : (chunk_len*batch_p, O) f32   per-chunk logits (time-major flat)
    hout_ref: (L, batch_p, H)        f32   final hidden state (resident output)
    h_carry : VMEM (L, batch_p, H)   f32   hidden state carried across chunks
    pre_ref : VMEM (rows, H)         f32   per-layer pre-activation slab
    act_ref : VMEM (rows, H)         f32   per-layer output slab (next layer input)
    """
    c = pl.program_id(0)

    @pl.when(c == 0)
    def _():
        h_carry[...] = h0_ref[...]

    layer_in = x_ref[...]                                   # (rows, H) f32

    for l in range(num_layers):                             # static unroll over layers
        w_ih = wih_ref[l]                                   # (H, H) bf16
        w_hh = whh_ref[l]                                   # (H, H) bf16

        # One big MXU call: input projection (+ combined bias) for every timestep
        # in this chunk, hoisted off the serial per-step critical path.
        pre_ref[...] = (
            jnp.dot(layer_in.astype(jnp.bfloat16), w_ih,
                    preferred_element_type=jnp.float32)
            + b_ref[l])

        # Serial recurrence: only h @ W_hh + tanh per step, f32 state.
        def step(t, h):
            start = pl.multiple_of(t * batch_p, batch_p)
            h_new = jnp.tanh(
                pre_ref[pl.ds(start, batch_p), :]
                + jnp.dot(h.astype(jnp.bfloat16), w_hh,
                          preferred_element_type=jnp.float32))
            act_ref[pl.ds(start, batch_p), :] = h_new
            return h_new

        h_final = lax.fori_loop(0, chunk_len, step, h_carry[l], unroll=True)
        h_carry[l] = h_final
        layer_in = act_ref[...]                             # next layer's input

    # FC head: one big matmul + one store for the whole chunk.
    out_ref[...] = (
        jnp.dot(layer_in.astype(jnp.bfloat16), wfc_ref[...],
                preferred_element_type=jnp.float32)
        + bfc_ref[...])

    hout_ref[...] = h_carry[...]


def _pick_chunk_len(seq, target=8):
    """Largest divisor of seq that is <= target."""
    for c in range(min(target, seq), 0, -1):
        if seq % c == 0:
            return c
    return seq


def rnn_forward(x_idx, params, *, num_layers, hidden_size, output_size,
                h0=None, chunk_target=8):
    """x_idx: (batch, seq) int32 token ids. Returns (out, hidden) like the torch module."""
    batch, seq = x_idx.shape

    # Sublane alignment: pad batch up to a multiple of 8 (padded rows sliced away).
    batch_p = ((batch + 7) // 8) * 8
    pad_b = batch_p - batch
    if pad_b:
        x_idx = jnp.pad(x_idx, ((0, pad_b), (0, 0)))

    chunk_len = _pick_chunk_len(seq, chunk_target)
    num_chunks = seq // chunk_len
    rows = chunk_len * batch_p

    # Embedding lookup (gather) stays in XLA glue.
    x_emb = jnp.take(params["embedding"], x_idx, axis=0)            # (batch_p, seq, H)
    x_flat = (jnp.transpose(x_emb, (1, 0, 2))                       # (seq, batch_p, H)
              .reshape(seq * batch_p, hidden_size)
              .astype(jnp.float32))

    if h0 is None:
        h0 = jnp.zeros((num_layers, batch_p, hidden_size), jnp.float32)
    elif h0.shape[1] != batch_p:
        h0 = jnp.pad(h0.astype(jnp.float32),
                     ((0, 0), (0, batch_p - h0.shape[1]), (0, 0)))

    # bf16 MXU operands (f32 accumulation & f32 recurrent state inside the kernel).
    w_ih = params["w_ih"].astype(jnp.bfloat16)
    w_hh = params["w_hh"].astype(jnp.bfloat16)
    w_fc = params["w_fc"].astype(jnp.bfloat16)
    bias = (params["b_ih"] + params["b_hh"]).astype(jnp.float32)     # combined bias
    b_fc = params["b_fc"].astype(jnp.float32)

    kernel = functools.partial(_rnn_kernel, num_layers=num_layers,
                               chunk_len=chunk_len, batch_p=batch_p)

    resident3 = lambda c: (0, 0, 0)
    resident2 = lambda c: (0, 0)

    out_flat, h_final = pl.pallas_call(
        kernel,
        out_shape=(
            jax.ShapeDtypeStruct((seq * batch_p, output_size), jnp.float32),
            jax.ShapeDtypeStruct((num_layers, batch_p, hidden_size), jnp.float32),
        ),
        grid_spec=pltpu.PrefetchScalarGridSpec(
            num_scalar_prefetch=0,
            grid=(num_chunks,),
            in_specs=[
                pl.BlockSpec((rows, hidden_size), lambda c: (c, 0)),              # x chunk
                pl.BlockSpec((num_layers, batch_p, hidden_size), resident3),      # h0
                pl.BlockSpec((num_layers, hidden_size, hidden_size), resident3),  # w_ih
                pl.BlockSpec((num_layers, hidden_size, hidden_size), resident3),  # w_hh
                pl.BlockSpec((num_layers, 1, hidden_size), resident3),            # bias
                pl.BlockSpec((hidden_size, output_size), resident2),              # w_fc
                pl.BlockSpec((1, output_size), resident2),                        # b_fc
            ],
            out_specs=(
                pl.BlockSpec((rows, output_size), lambda c: (c, 0)),              # out chunk
                pl.BlockSpec((num_layers, batch_p, hidden_size), resident3),      # h_out
            ),
            scratch_shapes=[
                pltpu.VMEM((num_layers, batch_p, hidden_size), jnp.float32),      # h carry
                pltpu.VMEM((rows, hidden_size), jnp.float32),                     # pre slab
                pltpu.VMEM((rows, hidden_size), jnp.float32),                     # act slab
            ],
        ),
        compiler_params=pltpu.CompilerParams(
            dimension_semantics=("arbitrary",),   # chunks are sequentially dependent
            vmem_limit_bytes=32 * 1024 * 1024,
        ),
    )(x_flat, h0, w_ih, w_hh, bias, w_fc, b_fc)

    # Back to PyTorch's batch-first row ordering, drop batch padding, then flatten
    # exactly like out.reshape(-1, hidden) -> fc in the torch module.
    out_seq = out_flat.reshape(seq, batch_p, output_size)[:, :batch]  # (seq, batch, O)
    out = jnp.transpose(out_seq, (1, 0, 2)).reshape(batch * seq, output_size)
    hidden = h_final[:, :batch]
    return out, hidden


def _reference_forward(x_idx, params, *, num_layers, hidden_size, output_size):
    """Pure-JAX reference mirroring torch RNN semantics with the same bf16 MXU
    operand / f32 accumulation precision choices as the kernel."""
    batch, seq = x_idx.shape
    x_emb = jnp.take(params["embedding"], x_idx, axis=0).astype(jnp.float32)
    w_ih = params["w_ih"].astype(jnp.bfloat16)
    w_hh = params["w_hh"].astype(jnp.bfloat16)
    w_fc = params["w_fc"].astype(jnp.bfloat16)
    bias = params["b_ih"] + params["b_hh"]

    layer_seq = x_emb                                  # (batch, seq, H)
    finals = []
    for l in range(num_layers):
        h = jnp.zeros((batch, hidden_size), jnp.float32)
        outs = []
        for t in range(seq):
            pre = (jnp.dot(layer_seq[:, t, :].astype(jnp.bfloat16), w_ih[l],
                           preferred_element_type=jnp.float32)
                   + bias[l]
                   + jnp.dot(h.astype(jnp.bfloat16), w_hh[l],
                             preferred_element_type=jnp.float32))
            h = jnp.tanh(pre)
            outs.append(h)
        finals.append(h)
        layer_seq = jnp.stack(outs, axis=1)            # (batch, seq, H)

    flat = layer_seq.reshape(-1, hidden_size)
    out = (jnp.dot(flat.astype(jnp.bfloat16), w_fc,
                   preferred_element_type=jnp.float32)
           + params["b_fc"])
    return out, jnp.stack(finals, axis=0)


def init_params(key, vocab_size, hidden_size, output_size, num_layers):
    """Deterministic uniform(-1/sqrt(H), 1/sqrt(H)) init, shapes matching nn.RNN."""
    ks = jax.random.split(key, 8)
    bound = 1.0 / jnp.sqrt(jnp.float32(hidden_size))
    u = lambda k, shape: jax.random.uniform(k, shape, jnp.float32, -bound, bound)
    return {
        "embedding": jax.random.normal(ks[0], (vocab_size, hidden_size), jnp.float32),
        # stored pre-transposed: (in_dim, out_dim) so the kernel does x @ W
        "w_ih": u(ks[1], (num_layers, hidden_size, hidden_size)),
        "w_hh": u(ks[2], (num_layers, hidden_size, hidden_size)),
        "b_ih": u(ks[3], (num_layers, 1, hidden_size)),
        "b_hh": u(ks[4], (num_layers, 1, hidden_size)),
        "w_fc": u(ks[5], (hidden_size, output_size)),
        "b_fc": u(ks[6], (1, output_size)),
    }


if __name__ == "__main__":
    # Small shapes consistent with the module: char-level vocab -> embedding ->
    # 2-layer tanh RNN (hidden_size=128 as in the spec) -> vocab-sized logits.
    batch, seq = 4, 16
    vocab_size = 16          # input_size == output_size == tokenizer.vocab_size
    hidden_size = 128
    num_layers = 2
    output_size = vocab_size

    key = jax.random.PRNGKey(0)
    k_param, k_x = jax.random.split(key)
    params = init_params(k_param, vocab_size, hidden_size, output_size, num_layers)
    x_idx = jax.random.randint(k_x, (batch, seq), 0, vocab_size, dtype=jnp.int32)

    out, hidden = rnn_forward(x_idx, params, num_layers=num_layers,
                              hidden_size=hidden_size, output_size=output_size)
    out = jax.block_until_ready(out)
    hidden = jax.block_until_ready(hidden)

    out_ref, hidden_ref = _reference_forward(x_idx, params, num_layers=num_layers,
                                             hidden_size=hidden_size,
                                             output_size=output_size)
    assert out.shape == (batch * seq, output_size)
    assert hidden.shape == (num_layers, batch, hidden_size)
    assert jnp.allclose(out, out_ref, atol=1e-3, rtol=1e-3)
    assert jnp.allclose(hidden, hidden_ref, atol=1e-3, rtol=1e-3)

    print("KERNEL_OK")
</pallas_src>

<mosaic_0001>
module attributes {stable_mosaic.version = 11 : i64} {
  func.func @_rnn_kernel(%arg0: i32, %arg1: memref<64x128xf32, #tpu.memory_space<vmem>>, %arg2: memref<2x8x128xf32, #tpu.memory_space<vmem>>, %arg3: memref<2x128x128xbf16, #tpu.memory_space<vmem>>, %arg4: memref<2x128x128xbf16, #tpu.memory_space<vmem>>, %arg5: memref<2x1x128xf32, #tpu.memory_space<vmem>>, %arg6: memref<128x16xbf16, #tpu.memory_space<vmem>>, %arg7: memref<1x16xf32, #tpu.memory_space<vmem>>, %arg8: memref<64x16xf32, #tpu.memory_space<vmem>>, %arg9: memref<2x8x128xf32, #tpu.memory_space<vmem>>, %arg10: memref<2x8x128xf32, #tpu.memory_space<vmem>>, %arg11: memref<64x128xf32, #tpu.memory_space<vmem>>, %arg12: memref<64x128xf32, #tpu.memory_space<vmem>>) attributes {dimension_semantics = [#tpu.dimension_semantics<arbitrary>], iteration_bounds = array<i64: 2>, scalar_prefetch = 0 : i64, scratch_operands = 3 : i64, tpu.core_type = #tpu.core_type<tc>, window_params = [{transform_indices = @transform_0, window_bounds = array<i64: 64, 128>}, {pipeline_mode = #tpu.pipeline_mode<synchronous>, transform_indices = @transform_1, window_bounds = array<i64: 2, 8, 128>}, {pipeline_mode = #tpu.pipeline_mode<synchronous>, transform_indices = @transform_2, window_bounds = array<i64: 2, 128, 128>}, {pipeline_mode = #tpu.pipeline_mode<synchronous>, transform_indices = @transform_3, window_bounds = array<i64: 2, 128, 128>}, {pipeline_mode = #tpu.pipeline_mode<synchronous>, transform_indices = @transform_4, window_bounds = array<i64: 2, 1, 128>}, {pipeline_mode = #tpu.pipeline_mode<synchronous>, transform_indices = @transform_5, window_bounds = array<i64: 128, 16>}, {pipeline_mode = #tpu.pipeline_mode<synchronous>, transform_indices = @transform_6, window_bounds = array<i64: 1, 16>}, {transform_indices = @transform_7, window_bounds = array<i64: 64, 16>}, {pipeline_mode = #tpu.pipeline_mode<synchronous>, transform_indices = @transform_8, window_bounds = array<i64: 2, 8, 128>}]} {
    %c0_i32 = arith.constant 0 : i32
    %0 = arith.cmpi eq, %arg0, %c0_i32 : i32
    %1 = arith.extui %0 : i1 to i32
    %c0_i32_0 = arith.constant 0 : i32
    %2 = arith.cmpi ne, %1, %c0_i32_0 : i32
    scf.if %2 {
      %c0_127 = arith.constant 0 : index
      %c0_128 = arith.constant 0 : index
      %c0_129 = arith.constant 0 : index
      %207 = vector.load %arg2[%c0_127, %c0_128, %c0_129] : memref<2x8x128xf32, #tpu.memory_space<vmem>>, vector<2x8x128xf32>
      %c0_130 = arith.constant 0 : index
      %c0_131 = arith.constant 0 : index
      %c0_132 = arith.constant 0 : index
      %208 = vector.load %arg10[%c0_130, %c0_131, %c0_132] : memref<2x8x128xf32, #tpu.memory_space<vmem>>, vector<2x8x128xf32>
      tpu.vector_store %arg10[%c0_130, %c0_131, %c0_132], %207 {strides = array<i32>} : memref<2x8x128xf32, #tpu.memory_space<vmem>>, vector<2x8x128xf32>,
    } else {
    }
    %c0 = arith.constant 0 : index
    %c0_1 = arith.constant 0 : index
    %3 = vector.load %arg1[%c0, %c0_1] : memref<64x128xf32, #tpu.memory_space<vmem>>, vector<64x128xf32>
    %c0_2 = arith.constant 0 : index
    %c0_3 = arith.constant 0 : index
    %c0_4 = arith.constant 0 : index
    %4 = vector.load %arg3[%c0_2, %c0_3, %c0_4] : memref<2x128x128xbf16, #tpu.memory_space<vmem>>, vector<1x128x128xbf16>
    %5 = vector.shape_cast %4 : vector<1x128x128xbf16> to vector<128x128xbf16>
    %c0_5 = arith.constant 0 : index
    %c0_6 = arith.constant 0 : index
    %c0_7 = arith.constant 0 : index
    %6 = vector.load %arg4[%c0_5, %c0_6, %c0_7] : memref<2x128x128xbf16, #tpu.memory_space<vmem>>, vector<1x128x128xbf16>
    %7 = vector.shape_cast %6 : vector<1x128x128xbf16> to vector<128x128xbf16>
    %8 = arith.truncf %3 : vector<64x128xf32> to vector<64x128xbf16>
    %cst = arith.constant dense<0.000000e+00> : vector<64x128xf32>
    %9 = tpu.matmul %8, %5, %cst {dimension_numbers = #tpu.dot_dimension_numbers<[1], [0], [0], [1], [0, 0, 1, 1], [], []>} : vector<64x128xbf16>, vector<128x128xbf16>, vector<64x128xf32> -> vector<64x128xf32>
    %c0_8 = arith.constant 0 : index
    %c0_9 = arith.constant 0 : index
    %c0_10 = arith.constant 0 : index
    %10 = vector.load %arg5[%c0_8, %c0_9, %c0_10] : memref<2x1x128xf32, #tpu.memory_space<vmem>>, vector<1x1x128xf32>
    %11 = vector.shape_cast %10 : vector<1x1x128xf32> to vector<1x128xf32>
    %12 = vector.broadcast %11 : vector<1x128xf32> to vector<64x128xf32>
    %13 = arith.addf %9, %12 : vector<64x128xf32>
    %c0_11 = arith.constant 0 : index
    %c0_12 = arith.constant 0 : index
    %14 = vector.load %arg11[%c0_11, %c0_12] : memref<64x128xf32, #tpu.memory_space<vmem>>, vector<64x128xf32>
    tpu.vector_store %arg11[%c0_11, %c0_12], %13 {strides = array<i32>} : memref<64x128xf32, #tpu.memory_space<vmem>>, vector<64x128xf32>,
    %c0_13 = arith.constant 0 : index
    %c0_14 = arith.constant 0 : index
    %c0_15 = arith.constant 0 : index
    %15 = vector.load %arg10[%c0_13, %c0_14, %c0_15] : memref<2x8x128xf32, #tpu.memory_space<vmem>>, vector<1x8x128xf32>
    %16 = vector.shape_cast %15 : vector<1x8x128xf32> to vector<8x128xf32>
    %c0_i32_16 = arith.constant 0 : i32
    %c8_i32 = arith.constant 8 : i32
    %17 = arith.muli %c0_i32_16, %c8_i32 : i32
    %18 = tpu.assume_multiple %17, 8 : i32
    %19 = arith.index_cast %18 : i32 to index
    %c0_17 = arith.constant 0 : index
    %20 = vector.load %arg11[%19, %c0_17] : memref<64x128xf32, #tpu.memory_space<vmem>>, vector<8x128xf32>
    %21 = arith.truncf %16 : vector<8x128xf32> to vector<8x128xbf16>
    %cst_18 = arith.constant dense<0.000000e+00> : vector<8x128xf32>
    %22 = tpu.matmul %21, %7, %cst_18 {dimension_numbers = #tpu.dot_dimension_numbers<[1], [0], [0], [1], [0, 0, 1, 1], [], []>} : vector<8x128xbf16>, vector<128x128xbf16>, vector<8x128xf32> -> vector<8x128xf32>
    %23 = arith.addf %20, %22 : vector<8x128xf32>
    %24 = math.tanh %23 : vector<8x128xf32>
    %25 = arith.index_cast %18 : i32 to index
    %c0_19 = arith.constant 0 : index
    %26 = vector.load %arg12[%25, %c0_19] : memref<64x128xf32, #tpu.memory_space<vmem>>, vector<8x128xf32>
    tpu.vector_store %arg12[%25, %c0_19], %24 {strides = array<i32>} : memref<64x128xf32, #tpu.memory_space<vmem>>, vector<8x128xf32>,
    %c1_i32 = arith.constant 1 : i32
    %c8_i32_20 = arith.constant 8 : i32
    %27 = arith.muli %c1_i32, %c8_i32_20 : i32
    %28 = tpu.assume_multiple %27, 8 : i32
    %29 = arith.index_cast %28 : i32 to index
    %c0_21 = arith.constant 0 : index
    %30 = vector.load %arg11[%29, %c0_21] : memref<64x128xf32, #tpu.memory_space<vmem>>, vector<8x128xf32>
    %31 = arith.truncf %24 : vector<8x128xf32> to vector<8x128xbf16>
    %cst_22 = arith.constant dense<0.000000e+00> : vector<8x128xf32>
    %32 = tpu.matmul %31, %7, %cst_22 {dimension_numbers = #tpu.dot_dimension_numbers<[1], [0], [0], [1], [0, 0, 1, 1], [], []>} : vector<8x128xbf16>, vector<128x128xbf16>, vector<8x128xf32> -> vector<8x128xf32>
    %33 = arith.addf %30, %32 : vector<8x128xf32>
    %34 = math.tanh %33 : vector<8x128xf32>
    %35 = arith.index_cast %28 : i32 to index
    %c0_23 = arith.constant 0 : index
    %36 = vector.load %arg12[%35, %c0_23] : memref<64x128xf32, #tpu.memory_space<vmem>>, vector<8x128xf32>
    tpu.vector_store %arg12[%35, %c0_23], %34 {strides = array<i32>} : memref<64x128xf32, #tpu.memory_space<vmem>>, vector<8x128xf32>,
    %c2_i32 = arith.constant 2 : i32
    %c8_i32_24 = arith.constant 8 : i32
    %37 = arith.muli %c2_i32, %c8_i32_24 : i32
    %38 = tpu.assume_multiple %37, 8 : i32
    %39 = arith.index_cast %38 : i32 to index
    %c0_25 = arith.constant 0 : index
    %40 = vector.load %arg11[%39, %c0_25] : memref<64x128xf32, #tpu.memory_space<vmem>>, vector<8x128xf32>
    %41 = arith.truncf %34 : vector<8x128xf32> to vector<8x128xbf16>
    %cst_26 = arith.constant dense<0.000000e+00> : vector<8x128xf32>
    %42 = tpu.matmul %41, %7, %cst_26 {dimension_numbers = #tpu.dot_dimension_numbers<[1], [0], [0], [1], [0, 0, 1, 1], [], []>} : vector<8x128xbf16>, vector<128x128xbf16>, vector<8x128xf32> -> vector<8x128xf32>
    %43 = arith.addf %40, %42 : vector<8x128xf32>
    %44 = math.tanh %43 : vector<8x128xf32>
    %45 = arith.index_cast %38 : i32 to index
    %c0_27 = arith.constant 0 : index
    %46 = vector.load %arg12[%45, %c0_27] : memref<64x128xf32, #tpu.memory_space<vmem>>, vector<8x128xf32>
    tpu.vector_store %arg12[%45, %c0_27], %44 {strides = array<i32>} : memref<64x128xf32, #tpu.memory_space<vmem>>, vector<8x128xf32>,
    %c3_i32 = arith.constant 3 : i32
    %c8_i32_28 = arith.constant 8 : i32
    %47 = arith.muli %c3_i32, %c8_i32_28 : i32
    %48 = tpu.assume_multiple %47, 8 : i32
    %49 = arith.index_cast %48 : i32 to index
    %c0_29 = arith.constant 0 : index
    %50 = vector.load %arg11[%49, %c0_29] : memref<64x128xf32, #tpu.memory_space<vmem>>, vector<8x128xf32>
    %51 = arith.truncf %44 : vector<8x128xf32> to vector<8x128xbf16>
    %cst_30 = arith.constant dense<0.000000e+00> : vector<8x128xf32>
    %52 = tpu.matmul %51, %7, %cst_30 {dimension_numbers = #tpu.dot_dimension_numbers<[1], [0], [0], [1], [0, 0, 1, 1], [], []>} : vector<8x128xbf16>, vector<128x128xbf16>, vector<8x128xf32> -> vector<8x128xf32>
    %53 = arith.addf %50, %52 : vector<8x128xf32>
    %54 = math.tanh %53 : vector<8x128xf32>
    %55 = arith.index_cast %48 : i32 to index
    %c0_31 = arith.constant 0 : index
    %56 = vector.load %arg12[%55, %c0_31] : memref<64x128xf32, #tpu.memory_space<vmem>>, vector<8x128xf32>
    tpu.vector_store %arg12[%55, %c0_31], %54 {strides = array<i32>} : memref<64x128xf32, #tpu.memory_space<vmem>>, vector<8x128xf32>,
    %c4_i32 = arith.constant 4 : i32
    %c8_i32_32 = arith.constant 8 : i32
    %57 = arith.muli %c4_i32, %c8_i32_32 : i32
    %58 = tpu.assume_multiple %57, 8 : i32
    %59 = arith.index_cast %58 : i32 to index
    %c0_33 = arith.constant 0 : index
    %60 = vector.load %arg11[%59, %c0_33] : memref<64x128xf32, #tpu.memory_space<vmem>>, vector<8x128xf32>
    %61 = arith.truncf %54 : vector<8x128xf32> to vector<8x128xbf16>
    %cst_34 = arith.constant dense<0.000000e+00> : vector<8x128xf32>
    %62 = tpu.matmul %61, %7, %cst_34 {dimension_numbers = #tpu.dot_dimension_numbers<[1], [0], [0], [1], [0, 0, 1, 1], [], []>} : vector<8x128xbf16>, vector<128x128xbf16>, vector<8x128xf32> -> vector<8x128xf32>
    %63 = arith.addf %60, %62 : vector<8x128xf32>
    %64 = math.tanh %63 : vector<8x128xf32>
    %65 = arith.index_cast %58 : i32 to index
    %c0_35 = arith.constant 0 : index
    %66 = vector.load %arg12[%65, %c0_35] : memref<64x128xf32, #tpu.memory_space<vmem>>, vector<8x128xf32>
    tpu.vector_store %arg12[%65, %c0_35], %64 {strides = array<i32>} : memref<64x128xf32, #tpu.memory_space<vmem>>, vector<8x128xf32>,
    %c5_i32 = arith.constant 5 : i32
    %c8_i32_36 = arith.constant 8 : i32
    %67 = arith.muli %c5_i32, %c8_i32_36 : i32
    %68 = tpu.assume_multiple %67, 8 : i32
    %69 = arith.index_cast %68 : i32 to index
    %c0_37 = arith.constant 0 : index
    %70 = vector.load %arg11[%69, %c0_37] : memref<64x128xf32, #tpu.memory_space<vmem>>, vector<8x128xf32>
    %71 = arith.truncf %64 : vector<8x128xf32> to vector<8x128xbf16>
    %cst_38 = arith.constant dense<0.000000e+00> : vector<8x128xf32>
    %72 = tpu.matmul %71, %7, %cst_38 {dimension_numbers = #tpu.dot_dimension_numbers<[1], [0], [0], [1], [0, 0, 1, 1], [], []>} : vector<8x128xbf16>, vector<128x128xbf16>, vector<8x128xf32> -> vector<8x128xf32>
    %73 = arith.addf %70, %72 : vector<8x128xf32>
    %74 = math.tanh %73 : vector<8x128xf32>
    %75 = arith.index_cast %68 : i32 to index
    %c0_39 = arith.constant 0 : index
    %76 = vector.load %arg12[%75, %c0_39] : memref<64x128xf32, #tpu.memory_space<vmem>>, vector<8x128xf32>
    tpu.vector_store %arg12[%75, %c0_39], %74 {strides = array<i32>} : memref<64x128xf32, #tpu.memory_space<vmem>>, vector<8x128xf32>,
    %c6_i32 = arith.constant 6 : i32
    %c8_i32_40 = arith.constant 8 : i32
    %77 = arith.muli %c6_i32, %c8_i32_40 : i32
    %78 = tpu.assume_multiple %77, 8 : i32
    %79 = arith.index_cast %78 : i32 to index
    %c0_41 = arith.constant 0 : index
    %80 = vector.load %arg11[%79, %c0_41] : memref<64x128xf32, #tpu.memory_space<vmem>>, vector<8x128xf32>
    %81 = arith.truncf %74 : vector<8x128xf32> to vector<8x128xbf16>
    %cst_42 = arith.constant dense<0.000000e+00> : vector<8x128xf32>
    %82 = tpu.matmul %81, %7, %cst_42 {dimension_numbers = #tpu.dot_dimension_numbers<[1], [0], [0], [1], [0, 0, 1, 1], [], []>} : vector<8x128xbf16>, vector<128x128xbf16>, vector<8x128xf32> -> vector<8x128xf32>
    %83 = arith.addf %80, %82 : vector<8x128xf32>
    %84 = math.tanh %83 : vector<8x128xf32>
    %85 = arith.index_cast %78 : i32 to index
    %c0_43 = arith.constant 0 : index
    %86 = vector.load %arg12[%85, %c0_43] : memref<64x128xf32, #tpu.memory_space<vmem>>, vector<8x128xf32>
    tpu.vector_store %arg12[%85, %c0_43], %84 {strides = array<i32>} : memref<64x128xf32, #tpu.memory_space<vmem>>, vector<8x128xf32>,
    %c7_i32 = arith.constant 7 : i32
    %c8_i32_44 = arith.constant 8 : i32
    %87 = arith.muli %c7_i32, %c8_i32_44 : i32
    %88 = tpu.assume_multiple %87, 8 : i32
    %89 = arith.index_cast %88 : i32 to index
    %c0_45 = arith.constant 0 : index
    %90 = vector.load %arg11[%89, %c0_45] : memref<64x128xf32, #tpu.memory_space<vmem>>, vector<8x128xf32>
    %91 = arith.truncf %84 : vector<8x128xf32> to vector<8x128xbf16>
    %cst_46 = arith.constant dense<0.000000e+00> : vector<8x128xf32>
    %92 = tpu.matmul %91, %7, %cst_46 {dimension_numbers = #tpu.dot_dimension_numbers<[1], [0], [0], [1], [0, 0, 1, 1], [], []>} : vector<8x128xbf16>, vector<128x128xbf16>, vector<8x128xf32> -> vector<8x128xf32>
    %93 = arith.addf %90, %92 : vector<8x128xf32>
    %94 = math.tanh %93 : vector<8x128xf32>
    %95 = arith.index_cast %88 : i32 to index
    %c0_47 = arith.constant 0 : index
    %96 = vector.load %arg12[%95, %c0_47] : memref<64x128xf32, #tpu.memory_space<vmem>>, vector<8x128xf32>
    tpu.vector_store %arg12[%95, %c0_47], %94 {strides = array<i32>} : memref<64x128xf32, #tpu.memory_space<vmem>>, vector<8x128xf32>,
    %c8_i32_48 = arith.constant 8 : i32
    %c0_49 = arith.constant 0 : index
    %c0_50 = arith.constant 0 : index
    %c0_51 = arith.constant 0 : index
    %97 = vector.load %arg10[%c0_49, %c0_50, %c0_51] : memref<2x8x128xf32, #tpu.memory_space<vmem>>, vector<1x8x128xf32>
    %98 = vector.shape_cast %97 : vector<1x8x128xf32> to vector<8x128xf32>
    %99 = vector.shape_cast %94 : vector<8x128xf32> to vector<1x8x128xf32>
    tpu.vector_store %arg10[%c0_49, %c0_50, %c0_51], %99 {strides = array<i32>} : memref<2x8x128xf32, #tpu.memory_space<vmem>>, vector<1x8x128xf32>,
    %c0_52 = arith.constant 0 : index
    %c0_53 = arith.constant 0 : index
    %100 = vector.load %arg12[%c0_52, %c0_53] : memref<64x128xf32, #tpu.memory_space<vmem>>, vector<64x128xf32>
    %c1 = arith.constant 1 : index
    %c0_54 = arith.constant 0 : index
    %c0_55 = arith.constant 0 : index
    %101 = vector.load %arg3[%c1, %c0_54, %c0_55] : memref<2x128x128xbf16, #tpu.memory_space<vmem>>, vector<1x128x128xbf16>
    %102 = vector.shape_cast %101 : vector<1x128x128xbf16> to vector<128x128xbf16>
    %c1_56 = arith.constant 1 : index
    %c0_57 = arith.constant 0 : index
    %c0_58 = arith.constant 0 : index
    %103 = vector.load %arg4[%c1_56, %c0_57, %c0_58] : memref<2x128x128xbf16, #tpu.memory_space<vmem>>, vector<1x128x128xbf16>
    %104 = vector.shape_cast %103 : vector<1x128x128xbf16> to vector<128x128xbf16>
    %105 = arith.truncf %100 : vector<64x128xf32> to vector<64x128xbf16>
    %cst_59 = arith.constant dense<0.000000e+00> : vector<64x128xf32>
    %106 = tpu.matmul %105, %102, %cst_59 {dimension_numbers = #tpu.dot_dimension_numbers<[1], [0], [0], [1], [0, 0, 1, 1], [], []>} : vector<64x128xbf16>, vector<128x128xbf16>, vector<64x128xf32> -> vector<64x128xf32>
    %c1_60 = arith.constant 1 : index
    %c0_61 = arith.constant 0 : index
    %c0_62 = arith.constant 0 : index
    %107 = vector.load %arg5[%c1_60, %c0_61, %c0_62] : memref<2x1x128xf32, #tpu.memory_space<vmem>>, vector<1x1x128xf32>
    %108 = vector.shape_cast %107 : vector<1x1x128xf32> to vector<1x128xf32>
    %109 = vector.broadcast %108 : vector<1x128xf32> to vector<64x128xf32>
    %110 = arith.addf %106, %109 : vector<64x128xf32>
    %c0_63 = arith.constant 0 : index
    %c0_64 = arith.constant 0 : index
    %111 = vector.load %arg11[%c0_63, %c0_64] : memref<64x128xf32, #tpu.memory_space<vmem>>, vector<64x128xf32>
    tpu.vector_store %arg11[%c0_63, %c0_64], %110 {strides = array<i32>} : memref<64x128xf32, #tpu.memory_space<vmem>>, vector<64x128xf32>,
    %c1_65 = arith.constant 1 : index
    %c0_66 = arith.constant 0 : index
    %c0_67 = arith.constant 0 : index
    %112 = vector.load %arg10[%c1_65, %c0_66, %c0_67] : memref<2x8x128xf32, #tpu.memory_space<vmem>>, vector<1x8x128xf32>
    %113 = vector.shape_cast %112 : vector<1x8x128xf32> to vector<8x128xf32>
    %c0_i32_68 = arith.constant 0 : i32
    %c8_i32_69 = arith.constant 8 : i32
    %114 = arith.muli %c0_i32_68, %c8_i32_69 : i32
    %115 = tpu.assume_multiple %114, 8 : i32
    %116 = arith.index_cast %115 : i32 to index
    %c0_70 = arith.constant 0 : index
    %117 = vector.load %arg11[%116, %c0_70] : memref<64x128xf32, #tpu.memory_space<vmem>>, vector<8x128xf32>
    %118 = arith.truncf %113 : vector<8x128xf32> to vector<8x128xbf16>
    %cst_71 = arith.constant dense<0.000000e+00> : vector<8x128xf32>
    %119 = tpu.matmul %118, %104, %cst_71 {dimension_numbers = #tpu.dot_dimension_numbers<[1], [0], [0], [1], [0, 0, 1, 1], [], []>} : vector<8x128xbf16>, vector<128x128xbf16>, vector<8x128xf32> -> vector<8x128xf32>
    %120 = arith.addf %117, %119 : vector<8x128xf32>
    %121 = math.tanh %120 : vector<8x128xf32>
    %122 = arith.index_cast %115 : i32 to index
    %c0_72 = arith.constant 0 : index
    %123 = vector.load %arg12[%122, %c0_72] : memref<64x128xf32, #tpu.memory_space<vmem>>, vector<8x128xf32>
    tpu.vector_store %arg12[%122, %c0_72], %121 {strides = array<i32>} : memref<64x128xf32, #tpu.memory_space<vmem>>, vector<8x128xf32>,
    %c1_i32_73 = arith.constant 1 : i32
    %c8_i32_74 = arith.constant 8 : i32
    %124 = arith.muli %c1_i32_73, %c8_i32_74 : i32
    %125 = tpu.assume_multiple %124, 8 : i32
    %126 = arith.index_cast %125 : i32 to index
    %c0_75 = arith.constant 0 : index
    %127 = vector.load %arg11[%126, %c0_75] : memref<64x128xf32, #tpu.memory_space<vmem>>, vector<8x128xf32>
    %128 = arith.truncf %121 : vector<8x128xf32> to vector<8x128xbf16>
    %cst_76 = arith.constant dense<0.000000e+00> : vector<8x128xf32>
    %129 = tpu.matmul %128, %104, %cst_76 {dimension_numbers = #tpu.dot_dimension_numbers<[1], [0], [0], [1], [0, 0, 1, 1], [], []>} : vector<8x128xbf16>, vector<128x128xbf16>, vector<8x128xf32> -> vector<8x128xf32>
    %130 = arith.addf %127, %129 : vector<8x128xf32>
    %131 = math.tanh %130 : vector<8x128xf32>
    %132 = arith.index_cast %125 : i32 to index
    %c0_77 = arith.constant 0 : index
    %133 = vector.load %arg12[%132, %c0_77] : memref<64x128xf32, #tpu.memory_space<vmem>>, vector<8x128xf32>
    tpu.vector_store %arg12[%132, %c0_77], %131 {strides = array<i32>} : memref<64x128xf32, #tpu.memory_space<vmem>>, vector<8x128xf32>,
    %c2_i32_78 = arith.constant 2 : i32
    %c8_i32_79 = arith.constant 8 : i32
    %134 = arith.muli %c2_i32_78, %c8_i32_79 : i32
    %135 = tpu.assume_multiple %134, 8 : i32
    %136 = arith.index_cast %135 : i32 to index
    %c0_80 = arith.constant 0 : index
    %137 = vector.load %arg11[%136, %c0_80] : memref<64x128xf32, #tpu.memory_space<vmem>>, vector<8x128xf32>
    %138 = arith.truncf %131 : vector<8x128xf32> to vector<8x128xbf16>
    %cst_81 = arith.constant dense<0.000000e+00> : vector<8x128xf32>
    %139 = tpu.matmul %138, %104, %cst_81 {dimension_numbers = #tpu.dot_dimension_numbers<[1], [0], [0], [1], [0, 0, 1, 1], [], []>} : vector<8x128xbf16>, vector<128x128xbf16>, vector<8x128xf32> -> vector<8x128xf32>
    %140 = arith.addf %137, %139 : vector<8x128xf32>
    %141 = math.tanh %140 : vector<8x128xf32>
    %142 = arith.index_cast %135 : i32 to index
    %c0_82 = arith.constant 0 : index
    %143 = vector.load %arg12[%142, %c0_82] : memref<64x128xf32, #tpu.memory_space<vmem>>, vector<8x128xf32>
    tpu.vector_store %arg12[%142, %c0_82], %141 {strides = array<i32>} : memref<64x128xf32, #tpu.memory_space<vmem>>, vector<8x128xf32>,
    %c3_i32_83 = arith.constant 3 : i32
    %c8_i32_84 = arith.constant 8 : i32
    %144 = arith.muli %c3_i32_83, %c8_i32_84 : i32
    %145 = tpu.assume_multiple %144, 8 : i32
    %146 = arith.index_cast %145 : i32 to index
    %c0_85 = arith.constant 0 : index
    %147 = vector.load %arg11[%146, %c0_85] : memref<64x128xf32, #tpu.memory_space<vmem>>, vector<8x128xf32>
    %148 = arith.truncf %141 : vector<8x128xf32> to vector<8x128xbf16>
    %cst_86 = arith.constant dense<0.000000e+00> : vector<8x128xf32>
    %149 = tpu.matmul %148, %104, %cst_86 {dimension_numbers = #tpu.dot_dimension_numbers<[1], [0], [0], [1], [0, 0, 1, 1], [], []>} : vector<8x128xbf16>, vector<128x128xbf16>, vector<8x128xf32> -> vector<8x128xf32>
    %150 = arith.addf %147, %149 : vector<8x128xf32>
    %151 = math.tanh %150 : vector<8x128xf32>
    %152 = arith.index_cast %145 : i32 to index
    %c0_87 = arith.constant 0 : index
    %153 = vector.load %arg12[%152, %c0_87] : memref<64x128xf32, #tpu.memory_space<vmem>>, vector<8x128xf32>
    tpu.vector_store %arg12[%152, %c0_87], %151 {strides = array<i32>} : memref<64x128xf32, #tpu.memory_space<vmem>>, vector<8x128xf32>,
    %c4_i32_88 = arith.constant 4 : i32
    %c8_i32_89 = arith.constant 8 : i32
    %154 = arith.muli %c4_i32_88, %c8_i32_89 : i32
    %155 = tpu.assume_multiple %154, 8 : i32
    %156 = arith.index_cast %155 : i32 to index
    %c0_90 = arith.constant 0 : index
    %157 = vector.load %arg11[%156, %c0_90] : memref<64x128xf32, #tpu.memory_space<vmem>>, vector<8x128xf32>
    %158 = arith.truncf %151 : vector<8x128xf32> to vector<8x128xbf16>
    %cst_91 = arith.constant dense<0.000000e+00> : vector<8x128xf32>
    %159 = tpu.matmul %158, %104, %cst_91 {dimension_numbers = #tpu.dot_dimension_numbers<[1], [0], [0], [1], [0, 0, 1, 1], [], []>} : vector<8x128xbf16>, vector<128x128xbf16>, vector<8x128xf32> -> vector<8x128xf32>
    %160 = arith.addf %157, %159 : vector<8x128xf32>
    %161 = math.tanh %160 : vector<8x128xf32>
    %162 = arith.index_cast %155 : i32 to index
    %c0_92 = arith.constant 0 : index
    %163 = vector.load %arg12[%162, %c0_92] : memref<64x128xf32, #tpu.memory_space<vmem>>, vector<8x128xf32>
    tpu.vector_store %arg12[%162, %c0_92], %161 {strides = array<i32>} : memref<64x128xf32, #tpu.memory_space<vmem>>, vector<8x128xf32>,
    %c5_i32_93 = arith.constant 5 : i32
    %c8_i32_94 = arith.constant 8 : i32
    %164 = arith.muli %c5_i32_93, %c8_i32_94 : i32
    %165 = tpu.assume_multiple %164, 8 : i32
    %166 = arith.index_cast %165 : i32 to index
    %c0_95 = arith.constant 0 : index
    %167 = vector.load %arg11[%166, %c0_95] : memref<64x128xf32, #tpu.memory_space<vmem>>, vector<8x128xf32>
    %168 = arith.truncf %161 : vector<8x128xf32> to vector<8x128xbf16>
    %cst_96 = arith.constant dense<0.000000e+00> : vector<8x128xf32>
    %169 = tpu.matmul %168, %104, %cst_96 {dimension_numbers = #tpu.dot_dimension_numbers<[1], [0], [0], [1], [0, 0, 1, 1], [], []>} : vector<8x128xbf16>, vector<128x128xbf16>, vector<8x128xf32> -> vector<8x128xf32>
    %170 = arith.addf %167, %169 : vector<8x128xf32>
    %171 = math.tanh %170 : vector<8x128xf32>
    %172 = arith.index_cast %165 : i32 to index
    %c0_97 = arith.constant 0 : index
    %173 = vector.load %arg12[%172, %c0_97] : memref<64x128xf32, #tpu.memory_space<vmem>>, vector<8x128xf32>
    tpu.vector_store %arg12[%172, %c0_97], %171 {strides = array<i32>} : memref<64x128xf32, #tpu.memory_space<vmem>>, vector<8x128xf32>,
    %c6_i32_98 = arith.constant 6 : i32
    %c8_i32_99 = arith.constant 8 : i32
    %174 = arith.muli %c6_i32_98, %c8_i32_99 : i32
    %175 = tpu.assume_multiple %174, 8 : i32
    %176 = arith.index_cast %175 : i32 to index
    %c0_100 = arith.constant 0 : index
    %177 = vector.load %arg11[%176, %c0_100] : memref<64x128xf32, #tpu.memory_space<vmem>>, vector<8x128xf32>
    %178 = arith.truncf %171 : vector<8x128xf32> to vector<8x128xbf16>
    %cst_101 = arith.constant dense<0.000000e+00> : vector<8x128xf32>
    %179 = tpu.matmul %178, %104, %cst_101 {dimension_numbers = #tpu.dot_dimension_numbers<[1], [0], [0], [1], [0, 0, 1, 1], [], []>} : vector<8x128xbf16>, vector<128x128xbf16>, vector<8x128xf32> -> vector<8x128xf32>
    %180 = arith.addf %177, %179 : vector<8x128xf32>
    %181 = math.tanh %180 : vector<8x128xf32>
    %182 = arith.index_cast %175 : i32 to index
    %c0_102 = arith.constant 0 : index
    %183 = vector.load %arg12[%182, %c0_102] : memref<64x128xf32, #tpu.memory_space<vmem>>, vector<8x128xf32>
    tpu.vector_store %arg12[%182, %c0_102], %181 {strides = array<i32>} : memref<64x128xf32, #tpu.memory_space<vmem>>, vector<8x128xf32>,
    %c7_i32_103 = arith.constant 7 : i32
    %c8_i32_104 = arith.constant 8 : i32
    %184 = arith.muli %c7_i32_103, %c8_i32_104 : i32
    %185 = tpu.assume_multiple %184, 8 : i32
    %186 = arith.index_cast %185 : i32 to index
    %c0_105 = arith.constant 0 : index
    %187 = vector.load %arg11[%186, %c0_105] : memref<64x128xf32, #tpu.memory_space<vmem>>, vector<8x128xf32>
    %188 = arith.truncf %181 : vector<8x128xf32> to vector<8x128xbf16>
    %cst_106 = arith.constant dense<0.000000e+00> : vector<8x128xf32>
    %189 = tpu.matmul %188, %104, %cst_106 {dimension_numbers = #tpu.dot_dimension_numbers<[1], [0], [0], [1], [0, 0, 1, 1], [], []>} : vector<8x128xbf16>, vector<128x128xbf16>, vector<8x128xf32> -> vector<8x128xf32>
    %190 = arith.addf %187, %189 : vector<8x128xf32>
    %191 = math.tanh %190 : vector<8x128xf32>
    %192 = arith.index_cast %185 : i32 to index
    %c0_107 = arith.constant 0 : index
    %193 = vector.load %arg12[%192, %c0_107] : memref<64x128xf32, #tpu.memory_space<vmem>>, vector<8x128xf32>
    tpu.vector_store %arg12[%192, %c0_107], %191 {strides = array<i32>} : memref<64x128xf32, #tpu.memory_space<vmem>>, vector<8x128xf32>,
    %c8_i32_108 = arith.constant 8 : i32
    %c1_109 = arith.constant 1 : index
    %c0_110 = arith.constant 0 : index
    %c0_111 = arith.constant 0 : index
    %194 = vector.load %arg10[%c1_109, %c0_110, %c0_111] : memref<2x8x128xf32, #tpu.memory_space<vmem>>, vector<1x8x128xf32>
    %195 = vector.shape_cast %194 : vector<1x8x128xf32> to vector<8x128xf32>
    %196 = vector.shape_cast %191 : vector<8x128xf32> to vector<1x8x128xf32>
    tpu.vector_store %arg10[%c1_109, %c0_110, %c0_111], %196 {strides = array<i32>} : memref<2x8x128xf32, #tpu.memory_space<vmem>>, vector<1x8x128xf32>,
    %c0_112 = arith.constant 0 : index
    %c0_113 = arith.constant 0 : index
    %197 = vector.load %arg12[%c0_112, %c0_113] : memref<64x128xf32, #tpu.memory_space<vmem>>, vector<64x128xf32>
    %198 = arith.truncf %197 : vector<64x128xf32> to vector<64x128xbf16>
    %c0_114 = arith.constant 0 : index
    %c0_115 = arith.constant 0 : index
    %199 = vector.load %arg6[%c0_114, %c0_115] : memref<128x16xbf16, #tpu.memory_space<vmem>>, vector<128x16xbf16>
    %cst_116 = arith.constant dense<0.000000e+00> : vector<64x16xf32>
    %200 = tpu.matmul %198, %199, %cst_116 {dimension_numbers = #tpu.dot_dimension_numbers<[1], [0], [0], [1], [0, 0, 1, 1], [], []>} : vector<64x128xbf16>, vector<128x16xbf16>, vector<64x16xf32> -> vector<64x16xf32>
    %c0_117 = arith.constant 0 : index
    %c0_118 = arith.constant 0 : index
    %201 = vector.load %arg7[%c0_117, %c0_118] : memref<1x16xf32, #tpu.memory_space<vmem>>, vector<1x16xf32>
    %202 = vector.broadcast %201 : vector<1x16xf32> to vector<64x16xf32>
    %203 = arith.addf %200, %202 : vector<64x16xf32>
    %c0_119 = arith.constant 0 : index
    %c0_120 = arith.constant 0 : index
    %204 = vector.load %arg8[%c0_119, %c0_120] : memref<64x16xf32, #tpu.memory_space<vmem>>, vector<64x16xf32>
    tpu.vector_store %arg8[%c0_119, %c0_120], %203 {strides = array<i32>} : memref<64x16xf32, #tpu.memory_space<vmem>>, vector<64x16xf32>,
    %c0_121 = arith.constant 0 : index
    %c0_122 = arith.constant 0 : index
    %c0_123 = arith.constant 0 : index
    %205 = vector.load %arg10[%c0_121, %c0_122, %c0_123] : memref<2x8x128xf32, #tpu.memory_space<vmem>>, vector<2x8x128xf32>
    %c0_124 = arith.constant 0 : index
    %c0_125 = arith.constant 0 : index
    %c0_126 = arith.constant 0 : index
    %206 = vector.load %arg9[%c0_124, %c0_125, %c0_126] : memref<2x8x128xf32, #tpu.memory_space<vmem>>, vector<2x8x128xf32>
    tpu.vector_store %arg9[%c0_124, %c0_125, %c0_126], %205 {strides = array<i32>} : memref<2x8x128xf32, #tpu.memory_space<vmem>>, vector<2x8x128xf32>,
    return
  }
  func.func @transform_0(%arg0: i32) -> (i32, i32) {
    %c0_i32 = arith.constant 0 : i32
    %c0_i32_0 = arith.constant 0 : i32
    return %arg0, %c0_i32 : i32, i32
  }
  func.func @transform_1(%arg0: i32) -> (i32, i32, i32) {
    %c0_i32 = arith.constant 0 : i32
    %c0_i32_0 = arith.constant 0 : i32
    %c0_i32_1 = arith.constant 0 : i32
    %c0_i32_2 = arith.constant 0 : i32
    return %c0_i32, %c0_i32_0, %c0_i32_1 : i32, i32, i32
  }
  func.func @transform_2(%arg0: i32) -> (i32, i32, i32) {
    %c0_i32 = arith.constant 0 : i32
    %c0_i32_0 = arith.constant 0 : i32
    %c0_i32_1 = arith.constant 0 : i32
    %c0_i32_2 = arith.constant 0 : i32
    return %c0_i32, %c0_i32_0, %c0_i32_1 : i32, i32, i32
  }
  func.func @transform_3(%arg0: i32) -> (i32, i32, i32) {
    %c0_i32 = arith.constant 0 : i32
    %c0_i32_0 = arith.constant 0 : i32
    %c0_i32_1 = arith.constant 0 : i32
    %c0_i32_2 = arith.constant 0 : i32
    return %c0_i32, %c0_i32_0, %c0_i32_1 : i32, i32, i32
  }
  func.func @transform_4(%arg0: i32) -> (i32, i32, i32) {
    %c0_i32 = arith.constant 0 : i32
    %c0_i32_0 = arith.constant 0 : i32
    %c0_i32_1 = arith.constant 0 : i32
    %c0_i32_2 = arith.constant 0 : i32
    return %c0_i32, %c0_i32_0, %c0_i32_1 : i32, i32, i32
  }
  func.func @transform_5(%arg0: i32) -> (i32, i32) {
    %c0_i32 = arith.constant 0 : i32
    %c0_i32_0 = arith.constant 0 : i32
    %c0_i32_1 = arith.constant 0 : i32
    return %c0_i32, %c0_i32_0 : i32, i32
  }
  func.func @transform_6(%arg0: i32) -> (i32, i32) {
    %c0_i32 = arith.constant 0 : i32
    %c0_i32_0 = arith.constant 0 : i32
    %c0_i32_1 = arith.constant 0 : i32
    return %c0_i32, %c0_i32_0 : i32, i32
  }
  func.func @transform_7(%arg0: i32) -> (i32, i32) {
    %c0_i32 = arith.constant 0 : i32
    %c0_i32_0 = arith.constant 0 : i32
    return %arg0, %c0_i32 : i32, i32
  }
  func.func @transform_8(%arg0: i32) -> (i32, i32, i32) {
    %c0_i32 = arith.constant 0 : i32
    %c0_i32_0 = arith.constant 0 : i32
    %c0_i32_1 = arith.constant 0 : i32
    %c0_i32_2 = arith.constant 0 : i32
    return %c0_i32, %c0_i32_0, %c0_i32_1 : i32, i32, i32
  }
}

</mosaic_0001>

<bundles_post_ra>
// kernel: tpu_custom_call.1
= control target key start
LH: loop header
LB: loop body
LE: loop exit
PB: predicated region body
PF: predicated region fallthrough
CT: control target
= control target key end

     0   :  { %14 = vsyncpa [#allocation6], 0  ;;  %s3493_s0 = inlined_call_operand.hbm [shape: f32[128,128], index: 0, kind: input, shape index: {}]   ;;  %s3494_s1 = inlined_call_operand.vmem [shape: f32[2,8,128], index: 1, kind: input, shape index: {}]   ;;  %s3495_s2 = inlined_call_operand.hbm [shape: bf16[2,128,128], index: 2, kind: input, shape index: {}]   ;;  %s3496_s3 = inlined_call_operand.hbm [shape: bf16[2,128,128], index: 3, kind: input, shape index: {}]   ;;  %s3497_s4 = inlined_call_operand.vmem [shape: f32[2,1,128], index: 4, kind: input, shape index: {}]   ;;  %s3498_s5 = inlined_call_operand.vmem [shape: bf16[128,16], index: 5, kind: input, shape index: {}]   ;;  %s3499_s6 = inlined_call_operand.vmem [shape: f32[1,16], index: 6, kind: input, shape index: {}]   ;;  %s3500_s7 = inlined_call_operand.vmem [shape: f32[128,16], index: 7, kind: output, shape index: {0}]   ;;  %s3501_s8 = inlined_call_operand.hbm [shape: f32[2,8,128], index: 8, kind: output, shape index: {1}]  }
   0x1   :  { %16 = vsyncpa [#allocation6 + $0x1], 0 }
   0x2   :  { %17 = vsyncpa [#allocation9], 0 }
   0x3   :  { %18 = vsyncpa [#allocation7], 0  ;;  %s2817_s27 = smov 0   ;;  %s2819_s28 = smov 0  }
   0x4   :  { %s2821_s29 = smov 0   ;;  %s2823_s30 = smov 0  }
   0x5 LB: > { %s2836_s9 = sadd.s32 4294967295, %s2758_s30   ;;  %p44_p0 = scmp.ne.s32.totalorder %s2750_s28, %s2746_s27  ;;  %s2758_s30 = sphi %s2823_s30, %s3518_s30   ;;  %s2754_s29 = sphi %s2821_s29, %s3517_s29   ;;  %s2750_s28 = sphi %s2819_s28, %s3516_s28   ;;  %s2746_s27 = sphi %s2817_s27, %s3515_s27  }
   0x6   : > { %p3502_p1 = scmp.eq.s32.totalorder %s2836_s9, 0  ;;  %p1822_p2 = scmp.ge.s32.totalorder %s2758_s30, 1 }
   0x7   : > { %p228_p3 = scmp.lt.s32.totalorder %s2758_s30, 3  ;;  %s2760_s12 = smov [#allocation8]  }
   0x8   : > { %p2845_p5 = por %p3502_p1, %p44_p0  ;;  %s243_s13 = sshll.u32 %s2760_s12, 4  ;;  %s244_s13 = int_to_ptr.vmem [resolvable:$true] %s243_s13 }
   0x9   : > { %p2849_p6 = pnand %p1822_p2, %p228_p3  ;;  %s2761_s15 = smov [#allocation10]  }
   0xa   : > { %s3505_s10 = scalar_select %p2845_p5, 1, 0 }
   0xb   : > { %s3506_s11 = scalar_select %p2849_p6, 1, 0 }
   0xc   : > { %p2471_p7 = pneg %p2849_p6  ;;  %s256_s16 = sshll.u32 %s2761_s15, 4  ;;  %s2861_s16 = int_to_ptr.vmem [resolvable:$true] %s256_s16 }
   0xd   : > { %s2604_s19 = scalar_lea.hbm %s3495_s2, 2048 }
   0xe   : > { %p2857_p8 = pnand %p2471_p7, %p3502_p1  ;;  %p2605_p9 = scmp.ne.s32.totalorder %s3495_s2, %s2604_s19 }
   0xf   : > { %p2611_p13 = scmp.lt.u32.totalorder %s2604_s19, %s3495_s2 }
  0x10   : > { %p2606_p10 = pneg %p2857_p8 }
  0x12   : > { %p2607_p11 = pnand %p2606_p10, %p2605_p9 }
  0x14   : > { %p2608_p12 = pneg %p2607_p11 }
  0x16   : > { %p2613_p0 = pnand %p2611_p13, %p2608_p12 }
  0x18   : > { %2616 = shalt.err (!%p2613_p0)
}
  0x19   : > { %s2617_s24 = scalar_lea.vmem %s244_s13, 2048  ;;  %p2625_p4 = scmp.lt.s32.totalorder %s244_s13, %s244_s13 }
  0x1a   : > { %p2618_p2 = scmp.ne.s32.totalorder %s244_s13, %s2617_s24  ;;  %p2626_p1 = scmp.lt.s32.totalorder %s2617_s24, %s2617_s24 }
  0x1c   : > { %p2620_p3 = pnand %p2618_p2, %p2606_p10  ;;  %p2627_p5 = por %p2626_p1, %p2625_p4 }
  0x1e   : > { %p2621_p7 = pneg %p2620_p3 }
  0x20   : > { %p2628_p6 = pnand %p2627_p5, %p2621_p7 }
  0x22   : > { %2631 = shalt.err (!%p2628_p6)
}
  0x23   : > { %s2762_s25 = smov 64   ;;  %s2763_s26 = smov 4  }
  0x24   : > { %2474 = dma.hbm_to_vmem [thread:$0]  (!%p2857_p8), %s3495_s2, 2048, %s244_s13, [#allocation9], %s2762_s25, %s2762_s25, %s2763_s26  }
  0x25   : > { %s2632_s18 = scalar_lea.hbm %s3496_s3, 2048 }
  0x26   : > { %p2633_p9 = scmp.ne.s32.totalorder %s3496_s3, %s2632_s18  ;;  %p2639_p5 = scmp.lt.u32.totalorder %s2632_s18, %s3496_s3 }
  0x28   : > { %p2635_p1 = pnand %p2633_p9, %p2606_p10 }
  0x2a   : > { %p2636_p4 = pneg %p2635_p1 }
  0x2c   : > { %p2641_p6 = pnand %p2639_p5, %p2636_p4 }
  0x2e   : > { %2644 = shalt.err (!%p2641_p6)
}
  0x2f   : > { %s2645_s13 = scalar_lea.vmem %s2861_s16, 2048  ;;  %p2653_p0 = scmp.lt.s32.totalorder %s2861_s16, %s2861_s16 }
  0x30   : > { %p2646_p11 = scmp.ne.s32.totalorder %s2861_s16, %s2645_s13  ;;  %p2654_p2 = scmp.lt.s32.totalorder %s2645_s13, %s2645_s13 }
  0x32   : > { %p2648_p12 = pnand %p2646_p11, %p2606_p10  ;;  %p2655_p3 = por %p2654_p2, %p2653_p0 }
  0x34   : > { %p2649_p13 = pneg %p2648_p12 }
  0x36   : > { %p2656_p7 = pnand %p2655_p3, %p2649_p13 }
  0x38   : > { %2659 = shalt.err (!%p2656_p7)
}
  0x39   : > { %2477 = dma.hbm_to_vmem [thread:$0]  (!%p2857_p8), %s3496_s3, 2048, %s2861_s16, [#allocation9], %s2762_s25, %s2762_s25, %s2763_s26  }
  0x3a   : > { %s2911_s27 = sadd.s32 1, %s2758_s30   ;;  %s31_s12 = sadd.s32 1, %s2754_s29 }
  0x3b   : > { %s28_s14 = ssub.s32 %s2758_s30, %s2911_s27  ;;  %p38_p10 = scmp.ne.s32.totalorder %s2754_s29, %s2750_s28 }
  0x3c   : > { %p29_p9 = scmp.eq.s32.totalorder %s28_s14, 0  ;;  %p39_p1 = scmp.eq.s32.totalorder %s2758_s30, 0 }
  0x3d   : > { %p2484_p4 = scmp.lt.s32.totalorder %s2758_s30, 2  ;;  %s279_s15 = sand.u32 1, %s2754_s29  }
  0x3e   : > { %s2922_s17 = scalar_select %p29_p9, %s2754_s29, %s31_s12  }
  0x3f   : > { %p40_p5 = por %p39_p1, %p38_p10  ;;  %s1826_s18 = sshll.u32 %s279_s15, 6 }
  0x40   : > { %s1884_s19 = sshll.u32 %s2758_s30, 10  ;;  %s283_s16 = scalar_lea.vmem [#allocation5], %s1826_s18 }
  0x41   : > { %s2928_s22 = scalar_lea.hbm %s3493_s0, %s1884_s19  ;;  %s290_s25 = sshll.u32 %s283_s16, 4  ;;  %s2934_s25 = int_to_ptr.vmem [resolvable:$true] %s290_s25 }
  0x42   : > { %p2930_p8 = pnand %p2484_p4, %p40_p5  ;;  %s2936_s30 = scalar_lea.sflag [#allocation6], %s279_s15 }
  0x43   : > { %s2660_s13 = scalar_lea.hbm %s2928_s22, 1024  ;;  %s2665_s12 = scalar_lea.hbm %s3493_s0, 2048 }
  0x44   : > { %p2661_p6 = scmp.ne.s32.totalorder %s2928_s22, %s2660_s13  ;;  %p2662_p11 = pneg %p2930_p8 }
  0x45   : > { %p2666_p0 = scmp.lt.u32.totalorder %s2928_s22, %s3493_s0  ;;  %p2667_p2 = scmp.lt.u32.totalorder %s2665_s12, %s2660_s13 }
  0x46   : > { %p2663_p12 = pnand %p2662_p11, %p2661_p6  ;;  %p2669_p7 = scmp.lt.u32.totalorder %s2660_s13, %s2928_s22 }
  0x47   : > { %p2668_p3 = por %p2667_p2, %p2666_p0 }
  0x48   : > { %p2664_p13 = pneg %p2663_p12 }
  0x49   : > { %p2670_p10 = por %p2669_p7, %p2668_p3 }
  0x4b   : > { %p2671_p9 = pnand %p2670_p10, %p2664_p13 }
  0x4d   : > { %2674 = shalt.err (!%p2671_p9)
}
  0x4e   : > { %s2675_s15 = scalar_lea.vmem %s2934_s25, 1024  ;;  %s2764_s19 = smov [#allocation5]  }
  0x4f   : > { %p2676_p1 = scmp.ne.s32.totalorder %s2934_s25, %s2675_s15  ;;  %s2680_s20 = sshll.u32 %s2764_s19, 4  ;;  %s2681_s20 = int_to_ptr.vmem [resolvable:$false] %s2680_s20 }
  0x50   : > { %s2682_s21 = scalar_lea.vmem %s2681_s20, 2048  ;;  %p2683_p6 = scmp.lt.s32.totalorder %s2934_s25, %s2681_s20 }
  0x51   : > { %p2678_p4 = pnand %p2676_p1, %p2662_p11  ;;  %p2684_p12 = scmp.lt.s32.totalorder %s2682_s21, %s2675_s15 }
  0x53   : > { %p2679_p5 = pneg %p2678_p4  ;;  %p2685_p0 = por %p2684_p12, %p2683_p6 }
  0x55   : > { %p2686_p2 = pnand %p2685_p0, %p2679_p5 }
  0x57   : > { %2689 = shalt.err (!%p2686_p2)
}
  0x58   : > { %s2765_s16 = smov 128   ;;  %s2766_s13 = smov 8  }
  0x59   : > { %2481 = dma.hbm_to_vmem [thread:$0]  (!%p2930_p8), %s2928_s22, 1024, %s2934_s25, %s2936_s30, %s2765_s16, %s2765_s16, %s2766_s13  }
  0x5a   : > { %p3509_p11 = scmp.ne.s32.totalorder %s3506_s11, 0 }
  0x5b   : > { %s304_s23 = sand.u32 (!%p3509_p11), 1, %s2750_s28   ;;  %p3510_p13 = scmp.ne.s32.totalorder (!%p3509_p11), %s3505_s10, 0 }
  0x5c   : > { %302 = sbr.rel (%p3509_p11) target bundleno = 3834 (0xefa), region = 48  ;;  %s1830_s24 = sshll.u32 (!%p3509_p11), %s304_s23, 6 }
  0x5d   : > { %s305_s12 = scalar_lea.sflag (!%p3509_p11), [#allocation6], %s304_s23  ;;  %s2967_s14 = scalar_lea.vmem (!%p3509_p11), [#allocation5], %s1830_s24 }
  0x63   : > { %2733 = dma.done.wait (%p3510_p13), %s305_s12, 1024  }
  0x64   : > { %2735 = vsyncadd (%p3510_p13), %s305_s12, 4294966272  ;;  %p3511_p3 = scmp.eq.s32.totalorder %s2836_s9, 0 }
  0x66   : > { %2737 = dma.done.wait (%p3511_p3), [#allocation9], 4096   ;;  %p3512_p8 = pmov %p3511_p3 }
  0x67   : > { %s1833_s11 = sshll.u32 %s2836_s9, 3  ;;  %p3513_p10 = scmp.ne.s32.totalorder %s2836_s9, 0 }
  0x68   : > { %2739 = vsyncadd (%p3512_p8), [#allocation9], 4294963200  ;;  %p351_p7 = scmp.lt.s32.totalorder %s1833_s11, 15  ;;  %v361_v0 = vld [vmem:[%s3494_s1] sm:$0xff] (!%p3513_p10)  ;;  %v362_v1 = vld [vmem:[%s3494_s1 + $0x8] sm:$0xff] (!%p3513_p10) }
  0x69   : > { %360 = sbr.rel (%p3513_p10) target bundleno = 112 (0x70), region = 64  ;;  %363 = vst [vmem:[#allocation2] sm:$0xff] (!%p3513_p10), %v361_v0  ;;  %364 = vst [vmem:[#allocation2 + $0x8] sm:$0xff] (!%p3513_p10), %v362_v1 }
  0x6a   : > { %s3520_s11 = smov (!%p351_p7, %s1833_s11), 15 }
  0x6b   : > { %s1834_s22 = sshll.u32 %s3520_s11, 3 }
  0x6c   : > { %s2981_s30 = scalar_lea.vmem %s3500_s7, %s1834_s22 }
  0x70 PF: > { %v2532_v2 = vld [vmem:[#allocation8] sm:$0xff]   ;;  %v2533_v3 = vld [vmem:[#allocation8 + $0x8] sm:$0xff]   ;;  %v2767_v4 = vmov 0.0   ;;  %vm2768_vm0 = vmmov 0   ;;  %v2534_v5 = vld [vmem:[#allocation8 + $0x10] sm:$0xff]   ;;  %vm1695_vm1 = vcmask 130048  }
  0x71   : > { %2109 = vmatprep.subr.bf16.mxu0 %v2767_v4  ;;  %2065 = vmatprep.subr.bf16.mxu1 %v2532_v2  ;;  %v2535_v6 = vld [vmem:[#allocation8 + $0x18] sm:$0xff]   ;;  %v365_v7 = vld [vmem:[%s2967_s14] sm:$0xff]  ;;  %v366_v8 = vld [vmem:[%s2967_s14 + $0x8] sm:$0xff]  ;;  %p2487_p9 = scmp.eq.s32.totalorder %s2836_s9, 1  ;;  %s2769_s12 = smov [#allocation11]  }
  0x72   : > { %2125 = vmatprep.mubr.msk.bf16.mxu0 %vm2768_vm0, %v2767_v4  ;;  %2066 = vmatpush3.bf16.msra.mxu1 %v2532_v2  ;;  %v405_v9 = vpack.c.bf16 %v366_v8, %v365_v7  ;;  %v2996_v10 = vld [vmem:[#allocation10] sm:$0xff]   ;;  %v3000_v12 = vld [vmem:[#allocation10 + $0x8] sm:$0xff]   ;;  %v2538_v14 = vld [vmem:[#allocation8 + $0x30] sm:$0xff]  }
  0x73   : > { %2067 = vmatprep.subr.bf16.mxu1 %v2533_v3  ;;  %v2536_v11 = vld [vmem:[#allocation8 + $0x20] sm:$0xff]   ;;  %2110 = vmatpush3.bf16.msra.mxu0 %v2996_v10  ;;  %v2537_v13 = vld [vmem:[#allocation8 + $0x28] sm:$0xff]   ;;  %v3004_v15 = vld [vmem:[#allocation10 + $0x10] sm:$0xff]  }
  0x74   : > { %2081 = vmatprep.mubr.bf16.mxu1 %v405_v9  ;;  %2111 = vmatprep.subr.bf16.mxu0 %v2767_v4  ;;  %v3006_v16 = vld [vmem:[#allocation10 + $0x18] sm:$0xff]   ;;  %v3010_v18 = vld [vmem:[#allocation10 + $0x20] sm:$0xff]   ;;  %v367_v19 = vld [vmem:[%s2967_s14 + $0x10] sm:$0xff] }
  0x75   : > { %v2539_v17 = vld [vmem:[#allocation8 + $0x38] sm:$0xff]   ;;  %v369_v21 = vld [vmem:[%s2967_s14 + $0x20] sm:$0xff]  ;;  %v370_v22 = vld [vmem:[%s2967_s14 + $0x28] sm:$0xff] }
  0x76   : > { %2068 = vmatpush3.bf16.msra.mxu1 %v2533_v3  ;;  %v368_v20 = vld [vmem:[%s2967_s14 + $0x18] sm:$0xff]  ;;  %v3018_v23 = vld [vmem:[#allocation10 + $0x28] sm:$0xff]   ;;  %v407_v25 = vpack.c.bf16 %v370_v22, %v369_v21  ;;  %v3023_v26 = vld [vmem:[#allocation10 + $0x30] sm:$0xff]  }
  0x77   : > { %2069 = vmatprep.subr.bf16.mxu1 %v2534_v5  ;;  %2112 = vmatpush3.bf16.msra.mxu0 %v3000_v12  ;;  %v406_v24 = vpack.c.bf16 %v368_v20, %v367_v19  ;;  %v371_v27 = vld [vmem:[%s2967_s14 + $0x30] sm:$0xff]  ;;  %v372_v28 = vld [vmem:[%s2967_s14 + $0x38] sm:$0xff]  ;;  %s1723_s14 = sshll.u32 %s2769_s12, 4  ;;  %s1724_s14 = int_to_ptr.vmem [resolvable:$true] %s1723_s14 }
  0x78   : > { %2113 = vmatprep.subr.bf16.mxu0 %v2767_v4  ;;  %v408_v29 = vpack.c.bf16 %v372_v28, %v371_v27  ;;  %v3033_v30 = vld [vmem:[#allocation10 + $0x38] sm:$0xff]   ;;  %v537_v31 = vld [vmem:[#allocation2] sm:$0xff]  ;;  %s2690_s11 = scalar_lea.vmem %s1724_s14, 256  ;;  %p2697_p6 = scmp.lt.s32.totalorder %s1724_s14, %s1724_s14 }
  0x79   : > { %v539_v32 = vpack.c.bf16 %v537_v31, %v537_v31  ;;  %v1836_v33 = vld [vmem:[%s3497_s4] ss:$0 sm:$0xff]  ;;  %p2691_p1 = scmp.ne.s32.totalorder %s1724_s14, %s2690_s11  ;;  %p2698_p12 = scmp.lt.s32.totalorder %s2690_s11, %s2690_s11 }
  0x7a   : > { %2070 = vmatpush3.bf16.msra.mxu1 %v2534_v5 }
  0x7b   : > { %2071 = vmatprep.subr.bf16.mxu1 %v2535_v6  ;;  %2114 = vmatpush3.bf16.msra.mxu0 %v3004_v15  ;;  %p2692_p4 = pnand %p2691_p1, %p2487_p9  ;;  %p2699_p0 = por %p2698_p12, %p2697_p6 }
  0x7c   : > { %2115 = vmatprep.subr.bf16.mxu0 %v2767_v4 }
  0x7d   : > { %p2693_p5 = pneg %p2692_p4 }
  0x7e   : > { %2072 = vmatpush3.bf16.msra.mxu1 %v2535_v6 }
  0x7f   : > { %2073 = vmatprep.subr.bf16.mxu1 %v2536_v11  ;;  %2116 = vmatpush3.bf16.msra.mxu0 %v3006_v16  ;;  %p2700_p2 = pnand %p2699_p0, %p2693_p5 }
  0x80   : > { %2117 = vmatprep.subr.bf16.mxu0 %v2767_v4 }
  0x82   : > { %2074 = vmatpush3.bf16.msra.mxu1 %v2536_v11 }
  0x83   : > { %2075 = vmatprep.subr.bf16.mxu1 %v2537_v13  ;;  %2118 = vmatpush3.bf16.msra.mxu0 %v3010_v18 }
  0x84   : > { %2119 = vmatprep.subr.bf16.mxu0 %v2767_v4 }
  0x86   : > { %2076 = vmatpush3.bf16.msra.mxu1 %v2537_v13 }
  0x87   : > { %2077 = vmatprep.subr.bf16.mxu1 %v2538_v14  ;;  %2120 = vmatpush3.bf16.msra.mxu0 %v3018_v23 }
  0x88   : > { %2121 = vmatprep.subr.bf16.mxu0 %v2767_v4 }
  0x8a   : > { %2078 = vmatpush3.bf16.msra.mxu1 %v2538_v14 }
  0x8b   : > { %2079 = vmatprep.subr.bf16.mxu1 %v2539_v17  ;;  %2122 = vmatpush3.bf16.msra.mxu0 %v3023_v26 }
  0x8c   : > { %2123 = vmatprep.subr.bf16.mxu0 %v2767_v4 }
  0x8e   : > { %2080 = vmatpush3.bf16.msra.mxu1 %v2539_v17 }
  0x8f   : > { %2089 = vmatprep.subr.bf16.mxu1 %v2767_v4  ;;  %2124 = vmatpush3.bf16.msra.mxu0 %v3033_v30 }
  0x90   : > { %2149 = vmatprep.subr.bf16.mxu0 %v2767_v4 }
  0x91   : > { %2082 = vmatmul.mubr.bf16.vlgmr.msra.gmra.mrb[0].mxu1 %v406_v24 }
  0x92   : > { %2090 = vmatpush3.bf16.msra.mxu1 %v2996_v10  ;;  %2085 = vmatprep.mubr.bf16.mxu1 %v407_v25 }
  0x93   : > { %2091 = vmatprep.subr.bf16.mxu1 %v2767_v4 }
  0x96   : > { %2092 = vmatpush3.bf16.msra.mxu1 %v3000_v12 }
  0x97   : > { %2093 = vmatprep.subr.bf16.mxu1 %v2767_v4 }
  0x99   : > { %2086 = vmatmul.mubr.bf16.gmra.mrb[4].mxu1 %v408_v29 }
  0x9a   : > { %2094 = vmatpush3.bf16.msra.mxu1 %v3004_v15  ;;  %2105 = vmatprep.mubr.msk.bf16.mxu1 %vm2768_vm0, %v2767_v4 }
  0x9b   : > { %2095 = vmatprep.subr.bf16.mxu1 %v2767_v4 }
  0x9e   : > { %2096 = vmatpush3.bf16.msra.mxu1 %v3006_v16 }
  0x9f   : > { %2097 = vmatprep.subr.bf16.mxu1 %v2767_v4 }
  0xa2   : > { %2098 = vmatpush3.bf16.msra.mxu1 %v3010_v18 }
  0xa3   : > { %2099 = vmatprep.subr.bf16.mxu1 %v2767_v4 }
  0xa6   : > { %2100 = vmatpush3.bf16.msra.mxu1 %v3018_v23 }
  0xa7   : > { %2101 = vmatprep.subr.bf16.mxu1 %v2767_v4 }
  0xaa   : > { %2102 = vmatpush3.bf16.msra.mxu1 %v3023_v26 }
  0xab   : > { %2103 = vmatprep.subr.bf16.mxu1 %v2767_v4 }
  0xae   : > { %2104 = vmatpush3.bf16.msra.mxu1 %v3033_v30 }
  0xaf   : > { %2129 = vmatprep.subr.bf16.mxu1 %v2767_v4 }
  0xb1   : > { %2106 = vmatmul.mubr.bf16.vlgmr.msra.gmra.mrb[8].mxu1 %v539_v32  ;;  %v2549_v32 = vld [vmem:[#allocation8 + $0x48] sm:$0xff]  }
  0xb2   : > { %2130 = vmatpush3.bf16.msra.mxu1 %v2996_v10  ;;  %2145 = vmatprep.mubr.msk.bf16.mxu1 %vm2768_vm0, %v2767_v4 }
  0xb3   : > { %2131 = vmatprep.subr.bf16.mxu1 %v2767_v4 }
  0xb6   : > { %2132 = vmatpush3.bf16.msra.mxu1 %v3000_v12 }
  0xb7   : > { %2133 = vmatprep.subr.bf16.mxu1 %v2767_v4 }
  0xba   : > { %2134 = vmatpush3.bf16.msra.mxu1 %v3004_v15 }
  0xbb   : > { %2135 = vmatprep.subr.bf16.mxu1 %v2767_v4 }
  0xbe   : > { %2136 = vmatpush3.bf16.msra.mxu1 %v3006_v16 }
  0xbf   : > { %2137 = vmatprep.subr.bf16.mxu1 %v2767_v4 }
  0xc2   : > { %2138 = vmatpush3.bf16.msra.mxu1 %v3010_v18 }
  0xc3   : > { %2139 = vmatprep.subr.bf16.mxu1 %v2767_v4 }
  0xc6   : > { %2140 = vmatpush3.bf16.msra.mxu1 %v3018_v23 }
  0xc7   : > { %2141 = vmatprep.subr.bf16.mxu1 %v2767_v4 }
  0xca   : > { %2142 = vmatpush3.bf16.msra.mxu1 %v3023_v26 }
  0xcb   : > { %2143 = vmatprep.subr.bf16.mxu1 %v2767_v4 }
  0xce   : > { %2144 = vmatpush3.bf16.msra.mxu1 %v3033_v30 }
  0xcf   : > { %2169 = vmatprep.subr.bf16.mxu1 %v2767_v4 }
 0x164   : > { %v2083_v34 = vpop.f32.mrb[0].mxu1 }
 0x165   : > { %v3074_v35 = vadd.f32 %v2083_v34, %v1836_v33  ;;  %v498_v36 = vpop.f32.mrb[1].mxu1  ;;  %v2552_v34 = vld [vmem:[#allocation8 + $0x60] sm:$0xff]  }
 0x166   : > { %v2084_v37 = vpop.f32.mrb[2].mxu1  ;;  %v499_v49 = vadd.f32 %v1836_v33, %v498_v36  ;;  %v2554_v36 = vld [vmem:[#allocation8 + $0x70] sm:$0xff]  }
 0x167   : > { %v3076_v38 = vadd.f32 %v2084_v37, %v1836_v33  ;;  %v501_v39 = vpop.f32.mrb[3].mxu1  ;;  %v2555_v37 = vld [vmem:[#allocation8 + $0x78] sm:$0xff]  }
 0x168   : > { %v502_v40 = vadd.f32 %v1836_v33, %v501_v39 }
 0x16c   : > { %v2087_v41 = vpop.f32.mrb[4].mxu1 }
 0x16d   : > { %v3078_v42 = vadd.f32 %v2087_v41, %v1836_v33  ;;  %v514_v43 = vpop.f32.mrb[5].mxu1  ;;  %v3204_v41 = vld [vmem:[#allocation10 + $0x48] sm:$0xff]  }
 0x16e   : > { %v3080_v44 = vadd.f32 %v1836_v33, %v514_v43  ;;  %v2088_v45 = vpop.f32.mrb[6].mxu1  ;;  %v3208_v43 = vld [vmem:[#allocation10 + $0x50] sm:$0xff]  }
 0x16f   : > { %v3082_v46 = vadd.f32 %v2088_v45, %v1836_v33  ;;  %v517_v47 = vpop.f32.mrb[7].mxu1  ;;  %v3216_v45 = vld [vmem:[#allocation10 + $0x60] sm:$0xff]  }
 0x170   : > { %v3084_v48 = vadd.f32 %v1836_v33, %v517_v47  ;;  %v2551_v33 = vld [vmem:[#allocation8 + $0x58] sm:$0xff]   ;;  %v3220_v47 = vld [vmem:[#allocation10 + $0x68] sm:$0xff]  }
 0x184   : > { %v622_v50 = vpop.f32.mrb[8].mxu1 }
 0x185   : > { %v628_v51 = vadd.f32 %v622_v50, %v499_v49  ;;  %v2107_v52 = vpop.f32.mrb[9].mxu1  ;;  %v3228_v49 = vld [vmem:[#allocation10 + $0x78] sm:$0xff]  }
 0x186   : > { %v625_v53 = vpop.f32.mrb[10].mxu1 }
 0x187   : > { %2572 = vtanh.f32 %v628_v51  ;;  %v2108_v54 = vpop.f32.mrb[11].mxu1 }
 0x191   : > { %v3086_v55 = vpop.eup %2572 }
 0x192   : > { %v633_v56 = vpack.c.bf16 %v3086_v55, %v3086_v55 }
 0x194   : > { %2126 = vmatmul.mubr.bf16.vlgmr.msra.gmra.mrb[0].mxu0 %v633_v56 }
 0x195   : > { %2150 = vmatpush3.bf16.msra.mxu0 %v2996_v10  ;;  %2165 = vmatprep.mubr.msk.bf16.mxu0 %vm2768_vm0, %v2767_v4 }
 0x196   : > { %2151 = vmatprep.subr.bf16.mxu0 %v2767_v4 }
 0x199   : > { %2152 = vmatpush3.bf16.msra.mxu0 %v3000_v12 }
 0x19a   : > { %2153 = vmatprep.subr.bf16.mxu0 %v2767_v4 }
 0x19d   : > { %2154 = vmatpush3.bf16.msra.mxu0 %v3004_v15 }
 0x19e   : > { %2155 = vmatprep.subr.bf16.mxu0 %v2767_v4 }
 0x1a1   : > { %2156 = vmatpush3.bf16.msra.mxu0 %v3006_v16 }
 0x1a2   : > { %2157 = vmatprep.subr.bf16.mxu0 %v2767_v4 }
 0x1a5   : > { %2158 = vmatpush3.bf16.msra.mxu0 %v3010_v18 }
 0x1a6   : > { %2159 = vmatprep.subr.bf16.mxu0 %v2767_v4 }
 0x1a9   : > { %2160 = vmatpush3.bf16.msra.mxu0 %v3018_v23 }
 0x1aa   : > { %2161 = vmatprep.subr.bf16.mxu0 %v2767_v4 }
 0x1ad   : > { %2162 = vmatpush3.bf16.msra.mxu0 %v3023_v26 }
 0x1ae   : > { %2163 = vmatprep.subr.bf16.mxu0 %v2767_v4 }
 0x1b1   : > { %2164 = vmatpush3.bf16.msra.mxu0 %v3033_v30 }
 0x1b2   : > { %2189 = vmatprep.subr.bf16.mxu0 %v2767_v4 }
 0x267   : > { %v668_v57 = vpop.f32.mrb[0].mxu0 }
 0x268   : > { %v674_v58 = vadd.f32 %v668_v57, %v502_v40  ;;  %v2127_v59 = vpop.f32.mrb[1].mxu0  ;;  %v3200_v40 = vld [vmem:[#allocation10 + $0x40] sm:$0xff]  }
 0x269   : > { %v671_v60 = vpop.f32.mrb[2].mxu0 }
 0x26a   : > { %2574 = vtanh.f32 %v674_v58  ;;  %v2128_v61 = vpop.f32.mrb[3].mxu0  ;;  %v1137_v60 = vld [vmem:[#allocation2 + $0x8] sm:$0xff] }
 0x26b   : > { %v1139_v61 = vpack.c.bf16 %v1137_v60, %v1137_v60 }
 0x274   : > { %v3108_v62 = vpop.eup %2574 }
 0x275   : > { %v680_v63 = vpack.c.bf16 %v3108_v62, %v3108_v62 }
 0x277   : > { %2146 = vmatmul.mubr.bf16.vlgmr.msra.gmra.mrb[12].mxu1 %v680_v63 }
 0x278   : > { %2170 = vmatpush3.bf16.msra.mxu1 %v2996_v10  ;;  %2185 = vmatprep.mubr.msk.bf16.mxu1 %vm2768_vm0, %v2767_v4 }
 0x279   : > { %2171 = vmatprep.subr.bf16.mxu1 %v2767_v4 }
 0x27c   : > { %2172 = vmatpush3.bf16.msra.mxu1 %v3000_v12 }
 0x27d   : > { %2173 = vmatprep.subr.bf16.mxu1 %v2767_v4 }
 0x280   : > { %2174 = vmatpush3.bf16.msra.mxu1 %v3004_v15 }
 0x281   : > { %2175 = vmatprep.subr.bf16.mxu1 %v2767_v4 }
 0x284   : > { %2176 = vmatpush3.bf16.msra.mxu1 %v3006_v16 }
 0x285   : > { %2177 = vmatprep.subr.bf16.mxu1 %v2767_v4 }
 0x288   : > { %2178 = vmatpush3.bf16.msra.mxu1 %v3010_v18 }
 0x289   : > { %2179 = vmatprep.subr.bf16.mxu1 %v2767_v4 }
 0x28c   : > { %2180 = vmatpush3.bf16.msra.mxu1 %v3018_v23 }
 0x28d   : > { %2181 = vmatprep.subr.bf16.mxu1 %v2767_v4 }
 0x290   : > { %2182 = vmatpush3.bf16.msra.mxu1 %v3023_v26 }
 0x291   : > { %2183 = vmatprep.subr.bf16.mxu1 %v2767_v4 }
 0x294   : > { %2184 = vmatpush3.bf16.msra.mxu1 %v3033_v30 }
 0x295   : > { %2209 = vmatprep.subr.bf16.mxu1 %v2767_v4 }
 0x34a   : > { %v715_v0 = vpop.f32.mrb[12].mxu1 }
 0x34b   : > { %v721_v1 = vadd.f32 %v715_v0, %v3074_v35  ;;  %v2147_v2 = vpop.f32.mrb[13].mxu1  ;;  %v2553_v35 = vld [vmem:[#allocation8 + $0x68] sm:$0xff]  }
 0x34c   : > { %v718_v3 = vpop.f32.mrb[14].mxu1 }
 0x34d   : > { %2576 = vtanh.f32 %v721_v1  ;;  %v2148_v5 = vpop.f32.mrb[15].mxu1 }
 0x357   : > { %v3131_v6 = vpop.eup %2576 }
 0x358   : > { %v727_v7 = vpack.c.bf16 %v3131_v6, %v3131_v6 }
 0x35a   : > { %2166 = vmatmul.mubr.bf16.vlgmr.msra.gmra.mrb[4].mxu0 %v727_v7 }
 0x35b   : > { %2190 = vmatpush3.bf16.msra.mxu0 %v2996_v10  ;;  %2205 = vmatprep.mubr.msk.bf16.mxu0 %vm2768_vm0, %v2767_v4 }
 0x35c   : > { %2191 = vmatprep.subr.bf16.mxu0 %v2767_v4 }
 0x35f   : > { %2192 = vmatpush3.bf16.msra.mxu0 %v3000_v12 }
 0x360   : > { %2193 = vmatprep.subr.bf16.mxu0 %v2767_v4 }
 0x363   : > { %2194 = vmatpush3.bf16.msra.mxu0 %v3004_v15 }
 0x364   : > { %2195 = vmatprep.subr.bf16.mxu0 %v2767_v4 }
 0x367   : > { %2196 = vmatpush3.bf16.msra.mxu0 %v3006_v16 }
 0x368   : > { %2197 = vmatprep.subr.bf16.mxu0 %v2767_v4 }
 0x36b   : > { %2198 = vmatpush3.bf16.msra.mxu0 %v3010_v18 }
 0x36c   : > { %2199 = vmatprep.subr.bf16.mxu0 %v2767_v4 }
 0x36f   : > { %2200 = vmatpush3.bf16.msra.mxu0 %v3018_v23 }
 0x370   : > { %2201 = vmatprep.subr.bf16.mxu0 %v2767_v4 }
 0x373   : > { %2202 = vmatpush3.bf16.msra.mxu0 %v3023_v26 }
 0x374   : > { %2203 = vmatprep.subr.bf16.mxu0 %v2767_v4 }
 0x377   : > { %2204 = vmatpush3.bf16.msra.mxu0 %v3033_v30 }
 0x378   : > { %2229 = vmatprep.subr.bf16.mxu0 %v2767_v4 }
 0x42d   : > { %v762_v8 = vpop.f32.mrb[4].mxu0 }
 0x42e   : > { %v768_v9 = vadd.f32 %v762_v8, %v3076_v38  ;;  %v2167_v11 = vpop.f32.mrb[5].mxu0 }
 0x42f   : > { %v765_v13 = vpop.f32.mrb[6].mxu0 }
 0x430   : > { %2578 = vtanh.f32 %v768_v9  ;;  %v2168_v14 = vpop.f32.mrb[7].mxu0 }
 0x43a   : > { %v3154_v17 = vpop.eup %2578 }
 0x43b   : > { %v774_v19 = vpack.c.bf16 %v3154_v17, %v3154_v17  ;;  %v1004_v38 = vpack.c.bf16 %v3154_v17, %v3131_v6  ;;  %v3281_v6 = vld [vmem:[%s3497_s4 + $0x1] ss:$0 sm:$0xff] }
 0x43d   : > { %2186 = vmatmul.mubr.bf16.vlgmr.msra.gmra.mrb[16].mxu1 %v774_v19 }
 0x43e   : > { %2210 = vmatpush3.bf16.msra.mxu1 %v2996_v10  ;;  %2225 = vmatprep.mubr.msk.bf16.mxu1 %vm2768_vm0, %v2767_v4 }
 0x43f   : > { %2211 = vmatprep.subr.bf16.mxu1 %v2767_v4 }
 0x442   : > { %2212 = vmatpush3.bf16.msra.mxu1 %v3000_v12 }
 0x443   : > { %2213 = vmatprep.subr.bf16.mxu1 %v2767_v4 }
 0x446   : > { %2214 = vmatpush3.bf16.msra.mxu1 %v3004_v15 }
 0x447   : > { %2215 = vmatprep.subr.bf16.mxu1 %v2767_v4 }
 0x44a   : > { %2216 = vmatpush3.bf16.msra.mxu1 %v3006_v16 }
 0x44b   : > { %2217 = vmatprep.subr.bf16.mxu1 %v2767_v4 }
 0x44e   : > { %2218 = vmatpush3.bf16.msra.mxu1 %v3010_v18 }
 0x44f   : > { %2219 = vmatprep.subr.bf16.mxu1 %v2767_v4 }
 0x452   : > { %2220 = vmatpush3.bf16.msra.mxu1 %v3018_v23 }
 0x453   : > { %2221 = vmatprep.subr.bf16.mxu1 %v2767_v4 }
 0x456   : > { %2222 = vmatpush3.bf16.msra.mxu1 %v3023_v26 }
 0x457   : > { %2223 = vmatprep.subr.bf16.mxu1 %v2767_v4 }
 0x45a   : > { %2224 = vmatpush3.bf16.msra.mxu1 %v3033_v30 }
 0x510   : > { %v809_v20 = vpop.f32.mrb[16].mxu1 }
 0x511   : > { %v815_v21 = vadd.f32 %v809_v20, %v3080_v44  ;;  %v2187_v22 = vpop.f32.mrb[17].mxu1  ;;  %v3212_v44 = vld [vmem:[#allocation10 + $0x58] sm:$0xff]  }
 0x512   : > { %v812_v24 = vpop.f32.mrb[18].mxu1 }
 0x513   : > { %2580 = vtanh.f32 %v815_v21  ;;  %v2188_v25 = vpop.f32.mrb[19].mxu1 }
 0x51d   : > { %v2581_v27 = vpop.eup %2580 }
 0x51e   : > { %v821_v28 = vpack.c.bf16 %v2581_v27, %v2581_v27 }
 0x520   : > { %2206 = vmatmul.mubr.bf16.vlgmr.msra.gmra.mrb[8].mxu0 %v821_v28 }
 0x521   : > { %2230 = vmatpush3.bf16.msra.mxu0 %v2996_v10  ;;  %2245 = vmatprep.mubr.msk.bf16.mxu0 %vm2768_vm0, %v2767_v4  ;;  %v2548_v10 = vld [vmem:[#allocation8 + $0x40] sm:$0xff]  }
 0x522   : > { %2231 = vmatprep.subr.bf16.mxu0 %v2767_v4  ;;  %2249 = vmatprep.subr.bf16.mxu1 %v2548_v10 }
 0x525   : > { %2232 = vmatpush3.bf16.msra.mxu0 %v3000_v12 }
 0x526   : > { %2233 = vmatprep.subr.bf16.mxu0 %v2767_v4 }
 0x529   : > { %2234 = vmatpush3.bf16.msra.mxu0 %v3004_v15 }
 0x52a   : > { %2235 = vmatprep.subr.bf16.mxu0 %v2767_v4 }
 0x52d   : > { %2236 = vmatpush3.bf16.msra.mxu0 %v3006_v16 }
 0x52e   : > { %2237 = vmatprep.subr.bf16.mxu0 %v2767_v4 }
 0x531   : > { %2238 = vmatpush3.bf16.msra.mxu0 %v3010_v18 }
 0x532   : > { %2239 = vmatprep.subr.bf16.mxu0 %v2767_v4 }
 0x535   : > { %2240 = vmatpush3.bf16.msra.mxu0 %v3018_v23 }
 0x536   : > { %2241 = vmatprep.subr.bf16.mxu0 %v2767_v4 }
 0x539   : > { %2242 = vmatpush3.bf16.msra.mxu0 %v3023_v26  ;;  %v1003_v26 = vpack.c.bf16 %v3108_v62, %v3086_v55 }
 0x53a   : > { %2243 = vmatprep.subr.bf16.mxu0 %v2767_v4 }
 0x53d   : > { %2244 = vmatpush3.bf16.msra.mxu0 %v3033_v30  ;;  %v2550_v30 = vld [vmem:[#allocation8 + $0x50] sm:$0xff]  }
 0x53e   : > { %2273 = vmatprep.subr.bf16.mxu0 %v2767_v4 }
 0x5f3   : > { %v856_v12 = vpop.f32.mrb[8].mxu0 }
 0x5f4   : > { %v862_v15 = vadd.f32 %v856_v12, %v3084_v48  ;;  %v2207_v16 = vpop.f32.mrb[9].mxu0  ;;  %v3224_v48 = vld [vmem:[#allocation10 + $0x70] sm:$0xff]  }
 0x5f5   : > { %v859_v18 = vpop.f32.mrb[10].mxu0 }
 0x5f6   : > { %2582 = vtanh.f32 %v862_v15  ;;  %v2208_v29 = vpop.f32.mrb[11].mxu0 }
 0x600   : > { %v2583_v23 = vpop.eup %2582 }
 0x601   : > { %v868_v31 = vpack.c.bf16 %v2583_v23, %v2583_v23  ;;  %v1005_v39 = vpack.c.bf16 %v2583_v23, %v2581_v27 }
 0x603   : > { %2226 = vmatmul.mubr.bf16.vlgmr.msra.gmra.mrb[20].mxu1 %v868_v31 }
 0x604   : > { %2250 = vmatpush3.bf16.msra.mxu1 %v2548_v10  ;;  %2265 = vmatprep.mubr.bf16.mxu1 %v1003_v26 }
 0x605   : > { %2251 = vmatprep.subr.bf16.mxu1 %v2549_v32 }
 0x608   : > { %2252 = vmatpush3.bf16.msra.mxu1 %v2549_v32 }
 0x609   : > { %2253 = vmatprep.subr.bf16.mxu1 %v2550_v30 }
 0x60c   : > { %2254 = vmatpush3.bf16.msra.mxu1 %v2550_v30 }
 0x60d   : > { %2255 = vmatprep.subr.bf16.mxu1 %v2551_v33 }
 0x610   : > { %2256 = vmatpush3.bf16.msra.mxu1 %v2551_v33 }
 0x611   : > { %2257 = vmatprep.subr.bf16.mxu1 %v2552_v34 }
 0x614   : > { %2258 = vmatpush3.bf16.msra.mxu1 %v2552_v34 }
 0x615   : > { %2259 = vmatprep.subr.bf16.mxu1 %v2553_v35 }
 0x618   : > { %2260 = vmatpush3.bf16.msra.mxu1 %v2553_v35 }
 0x619   : > { %2261 = vmatprep.subr.bf16.mxu1 %v2554_v36 }
 0x61c   : > { %2262 = vmatpush3.bf16.msra.mxu1 %v2554_v36 }
 0x61d   : > { %2263 = vmatprep.subr.bf16.mxu1 %v2555_v37 }
 0x620   : > { %2264 = vmatpush3.bf16.msra.mxu1 %v2555_v37 }
 0x621   : > { %2293 = vmatprep.subr.bf16.mxu1 %v2767_v4 }
 0x623   : > { %2266 = vmatmul.mubr.bf16.vlgmr.msra.gmra.mrb[24].mxu1 %v1004_v38 }
 0x624   : > { %2269 = vmatprep.mubr.bf16.mxu1 %v1005_v39  ;;  %2294 = vmatpush3.bf16.msra.mxu1 %v3200_v40 }
 0x625   : > { %2295 = vmatprep.subr.bf16.mxu1 %v2767_v4 }
 0x628   : > { %2296 = vmatpush3.bf16.msra.mxu1 %v3204_v41 }
 0x629   : > { %2297 = vmatprep.subr.bf16.mxu1 %v2767_v4 }
 0x62c   : > { %2298 = vmatpush3.bf16.msra.mxu1 %v3208_v43 }
 0x62d   : > { %2299 = vmatprep.subr.bf16.mxu1 %v2767_v4 }
 0x630   : > { %2300 = vmatpush3.bf16.msra.mxu1 %v3212_v44 }
 0x631   : > { %2301 = vmatprep.subr.bf16.mxu1 %v2767_v4 }
 0x634   : > { %2302 = vmatpush3.bf16.msra.mxu1 %v3216_v45 }
 0x635   : > { %2303 = vmatprep.subr.bf16.mxu1 %v2767_v4 }
 0x638   : > { %2304 = vmatpush3.bf16.msra.mxu1 %v3220_v47 }
 0x639   : > { %2305 = vmatprep.subr.bf16.mxu1 %v2767_v4 }
 0x63c   : > { %2306 = vmatpush3.bf16.msra.mxu1 %v3224_v48 }
 0x63d   : > { %2307 = vmatprep.subr.bf16.mxu1 %v2767_v4 }
 0x640   : > { %2308 = vmatpush3.bf16.msra.mxu1 %v3228_v49 }
 0x641   : > { %2333 = vmatprep.subr.bf16.mxu1 %v2767_v4 }
 0x6d6   : > { %v903_v50 = vpop.f32.mrb[20].mxu1 }
 0x6d7   : > { %v909_v51 = vadd.f32 %v903_v50, %v3078_v42  ;;  %v2227_v52 = vpop.f32.mrb[21].mxu1 }
 0x6d8   : > { %v906_v53 = vpop.f32.mrb[22].mxu1 }
 0x6d9   : > { %2584 = vtanh.f32 %v909_v51  ;;  %v2228_v54 = vpop.f32.mrb[23].mxu1 }
 0x6e3   : > { %v2585_v55 = vpop.eup %2584 }
 0x6e4   : > { %v915_v56 = vpack.c.bf16 %v2585_v55, %v2585_v55 }
 0x6e6   : > { %2246 = vmatmul.mubr.bf16.vlgmr.msra.gmra.mrb[12].mxu0 %v915_v56 }
 0x6e7   : > { %2274 = vmatpush3.bf16.msra.mxu0 %v3200_v40  ;;  %2289 = vmatprep.mubr.msk.bf16.mxu0 %vm2768_vm0, %v2767_v4 }
 0x6e8   : > { %2275 = vmatprep.subr.bf16.mxu0 %v2767_v4 }
 0x6eb   : > { %2276 = vmatpush3.bf16.msra.mxu0 %v3204_v41 }
 0x6ec   : > { %2277 = vmatprep.subr.bf16.mxu0 %v2767_v4 }
 0x6ef   : > { %2278 = vmatpush3.bf16.msra.mxu0 %v3208_v43 }
 0x6f0   : > { %2279 = vmatprep.subr.bf16.mxu0 %v2767_v4 }
 0x6f3   : > { %2280 = vmatpush3.bf16.msra.mxu0 %v3212_v44 }
 0x6f4   : > { %2281 = vmatprep.subr.bf16.mxu0 %v2767_v4 }
 0x6f6   : > { %v3243_v42 = vpop.f32.mrb[24].mxu1 }
 0x6f7   : > { %v1097_v57 = vpop.f32.mrb[25].mxu1  ;;  %2282 = vmatpush3.bf16.msra.mxu0 %v3216_v45  ;;  %v1106_v18 = vadd.f32 %v3243_v42, %v3281_v6 }
 0x6f8   : > { %v3246_v58 = vpop.f32.mrb[26].mxu1  ;;  %2283 = vmatprep.subr.bf16.mxu0 %v2767_v4  ;;  %v1098_v7 = vadd.f32 %v3281_v6, %v1097_v57 }
 0x6f9   : > { %v3249_v59 = vpop.f32.mrb[27].mxu1  ;;  %v1109_v34 = vadd.f32 %v3246_v58, %v3281_v6 }
 0x6fa   : > { %v1101_v24 = vadd.f32 %v3281_v6, %v3249_v59 }
 0x6fb   : > { %2284 = vmatpush3.bf16.msra.mxu0 %v3220_v47 }
 0x6fc   : > { %2285 = vmatprep.subr.bf16.mxu0 %v2767_v4 }
 0x6ff   : > { %2286 = vmatpush3.bf16.msra.mxu0 %v3224_v48 }
 0x700   : > { %2287 = vmatprep.subr.bf16.mxu0 %v2767_v4 }
 0x703   : > { %2288 = vmatpush3.bf16.msra.mxu0 %v3228_v49 }
 0x704   : > { %2313 = vmatprep.subr.bf16.mxu0 %v2767_v4 }
 0x706   : > { %2290 = vmatmul.mubr.bf16.vlgmr.msra.gmra.mrb[16].mxu0 %v1139_v61  ;;  %v2566_v61 = vld [vmem:[%s3498_s5 + $0x10] sm:$0xff]  }
 0x707   : > { %2314 = vmatpush3.bf16.msra.mxu0 %v3200_v40  ;;  %2329 = vmatprep.mubr.msk.bf16.mxu0 %vm2768_vm0, %v2767_v4 }
 0x708   : > { %2315 = vmatprep.subr.bf16.mxu0 %v2767_v4 }
 0x70b   : > { %2316 = vmatpush3.bf16.msra.mxu0 %v3204_v41 }
 0x70c   : > { %2317 = vmatprep.subr.bf16.mxu0 %v2767_v4 }
 0x70f   : > { %2318 = vmatpush3.bf16.msra.mxu0 %v3208_v43 }
 0x710   : > { %2319 = vmatprep.subr.bf16.mxu0 %v2767_v4 }
 0x713   : > { %2320 = vmatpush3.bf16.msra.mxu0 %v3212_v44 }
 0x714   : > { %2321 = vmatprep.subr.bf16.mxu0 %v2767_v4 }
 0x717   : > { %2322 = vmatpush3.bf16.msra.mxu0 %v3216_v45 }
 0x718   : > { %2323 = vmatprep.subr.bf16.mxu0 %v2767_v4 }
 0x71b   : > { %2324 = vmatpush3.bf16.msra.mxu0 %v3220_v47 }
 0x71c   : > { %2325 = vmatprep.subr.bf16.mxu0 %v2767_v4 }
 0x71f   : > { %2326 = vmatpush3.bf16.msra.mxu0 %v3224_v48 }
 0x720   : > { %2327 = vmatprep.subr.bf16.mxu0 %v2767_v4 }
 0x723   : > { %2328 = vmatpush3.bf16.msra.mxu0 %v3228_v49 }
 0x724   : > { %2353 = vmatprep.subr.bf16.mxu0 %v2767_v4 }
 0x7b9   : > { %v950_v62 = vpop.f32.mrb[12].mxu0 }
 0x7ba   : > { %v956_v63 = vadd.f32 %v950_v62, %v3082_v46  ;;  %v2247_v0 = vpop.f32.mrb[13].mxu0  ;;  %v2567_v62 = vld [vmem:[%s3498_s5 + $0x18] sm:$0xff]  }
 0x7bb   : > { %v953_v1 = vpop.f32.mrb[14].mxu0  ;;  %v2569_v0 = vld [vmem:[%s3498_s5 + $0x28] sm:$0xff]  }
 0x7bc   : > { %2586 = vtanh.f32 %v956_v63  ;;  %v2248_v2 = vpop.f32.mrb[15].mxu0  ;;  %v2568_v63 = vld [vmem:[%s3498_s5 + $0x20] sm:$0xff]   ;;  %v2570_v1 = vld [vmem:[%s3498_s5 + $0x30] sm:$0xff]  }
 0x7bd   : > { %v2571_v2 = vld [vmem:[%s3498_s5 + $0x38] sm:$0xff]  }
 0x7c6   : > { %v2587_v3 = vpop.eup %2586 }
 0x7c7   : > { %960 = vst [vmem:[#allocation2] sm:$0xff] %v2587_v3  ;;  %v1006_v5 = vpack.c.bf16 %v2587_v3, %v2585_v55  ;;  %1706 = vst [vmem:[#allocation11] sm:$0xff] %v2587_v3 }
 0x7c9   : > { %2270 = vmatmul.mubr.bf16.gmra.mrb[28].mxu1 %v1006_v5 }
 0x7ca   : > { %2309 = vmatprep.mubr.msk.bf16.mxu1 %vm2768_vm0, %v2767_v4 }
 0x7d9   : > { %v1222_v46 = vpop.f32.mrb[16].mxu0 }
 0x7da   : > { %v1228_v8 = vadd.f32 %v1222_v46, %v1098_v7  ;;  %v2291_v9 = vpop.f32.mrb[17].mxu0 }
 0x7db   : > { %v1225_v11 = vpop.f32.mrb[18].mxu0 }
 0x7dc   : > { %2588 = vtanh.f32 %v1228_v8  ;;  %v2292_v13 = vpop.f32.mrb[19].mxu0 }
 0x7e6   : > { %v3284_v14 = vpop.eup %2588 }
 0x7e7   : > { %v1232_v17 = vpack.c.bf16 %v3284_v14, %v3284_v14 }
 0x7e9   : > { %2310 = vmatmul.mubr.bf16.vlgmr.msra.gmra.mrb[32].mxu1 %v1232_v17 }
 0x7ea   : > { %2334 = vmatpush3.bf16.msra.mxu1 %v3200_v40  ;;  %2349 = vmatprep.mubr.msk.bf16.mxu1 %vm2768_vm0, %v2767_v4 }
 0x7eb   : > { %2335 = vmatprep.subr.bf16.mxu1 %v2767_v4 }
 0x7ee   : > { %2336 = vmatpush3.bf16.msra.mxu1 %v3204_v41 }
 0x7ef   : > { %2337 = vmatprep.subr.bf16.mxu1 %v2767_v4 }
 0x7f2   : > { %2338 = vmatpush3.bf16.msra.mxu1 %v3208_v43 }
 0x7f3   : > { %2339 = vmatprep.subr.bf16.mxu1 %v2767_v4 }
 0x7f6   : > { %2340 = vmatpush3.bf16.msra.mxu1 %v3212_v44 }
 0x7f7   : > { %2341 = vmatprep.subr.bf16.mxu1 %v2767_v4 }
 0x7fa   : > { %2342 = vmatpush3.bf16.msra.mxu1 %v3216_v45 }
 0x7fb   : > { %2343 = vmatprep.subr.bf16.mxu1 %v2767_v4 }
 0x7fe   : > { %2344 = vmatpush3.bf16.msra.mxu1 %v3220_v47 }
 0x7ff   : > { %2345 = vmatprep.subr.bf16.mxu1 %v2767_v4 }
 0x802   : > { %2346 = vmatpush3.bf16.msra.mxu1 %v3224_v48 }
 0x803   : > { %2347 = vmatprep.subr.bf16.mxu1 %v2767_v4 }
 0x806   : > { %2348 = vmatpush3.bf16.msra.mxu1 %v3228_v49 }
 0x807   : > { %2373 = vmatprep.subr.bf16.mxu1 %v2767_v4 }
 0x89c   : > { %v3306_v19 = vpop.f32.mrb[28].mxu1 }
 0x89d   : > { %v3308_v20 = vpop.f32.mrb[29].mxu1  ;;  %v1122_v7 = vadd.f32 %v3306_v19, %v3281_v6 }
 0x89e   : > { %v3310_v21 = vpop.f32.mrb[30].mxu1  ;;  %v1114_v52 = vadd.f32 %v3281_v6, %v3308_v20  ;;  %v1871_v20 = vld [vmem:[%s3499_s6] ss:$0 sm:$0xff] }
 0x89f   : > { %v3312_v22 = vpop.f32.mrb[31].mxu1 }
 0x8bc   : > { %v1267_v25 = vpop.f32.mrb[32].mxu1 }
 0x8bd   : > { %v1273_v27 = vadd.f32 %v1267_v25, %v1101_v24  ;;  %v2311_v28 = vpop.f32.mrb[33].mxu1 }
 0x8be   : > { %v1270_v10 = vpop.f32.mrb[34].mxu1 }
 0x8bf   : > { %2590 = vtanh.f32 %v1273_v27  ;;  %v2312_v12 = vpop.f32.mrb[35].mxu1 }
 0x8c9   : > { %v3316_v15 = vpop.eup %2590 }
 0x8ca   : > { %v1277_v16 = vpack.c.bf16 %v3316_v15, %v3316_v15 }
 0x8cc   : > { %2330 = vmatmul.mubr.bf16.vlgmr.msra.gmra.mrb[20].mxu0 %v1277_v16 }
 0x8cd   : > { %2354 = vmatpush3.bf16.msra.mxu0 %v3200_v40  ;;  %2369 = vmatprep.mubr.msk.bf16.mxu0 %vm2768_vm0, %v2767_v4 }
 0x8ce   : > { %2355 = vmatprep.subr.bf16.mxu0 %v2767_v4 }
 0x8d1   : > { %2356 = vmatpush3.bf16.msra.mxu0 %v3204_v41 }
 0x8d2   : > { %2357 = vmatprep.subr.bf16.mxu0 %v2767_v4 }
 0x8d5   : > { %2358 = vmatpush3.bf16.msra.mxu0 %v3208_v43 }
 0x8d6   : > { %2359 = vmatprep.subr.bf16.mxu0 %v2767_v4 }
 0x8d9   : > { %2360 = vmatpush3.bf16.msra.mxu0 %v3212_v44 }
 0x8da   : > { %2361 = vmatprep.subr.bf16.mxu0 %v2767_v4 }
 0x8dd   : > { %2362 = vmatpush3.bf16.msra.mxu0 %v3216_v45 }
 0x8de   : > { %2363 = vmatprep.subr.bf16.mxu0 %v2767_v4 }
 0x8e1   : > { %2364 = vmatpush3.bf16.msra.mxu0 %v3220_v47 }
 0x8e2   : > { %2365 = vmatprep.subr.bf16.mxu0 %v2767_v4 }
 0x8e5   : > { %2366 = vmatpush3.bf16.msra.mxu0 %v3224_v48 }
 0x8e6   : > { %2367 = vmatprep.subr.bf16.mxu0 %v2767_v4 }
 0x8e9   : > { %2368 = vmatpush3.bf16.msra.mxu0 %v3228_v49 }
 0x8ea   : > { %2393 = vmatprep.subr.bf16.mxu0 %v2767_v4 }
 0x99f   : > { %v1312_v29 = vpop.f32.mrb[20].mxu0 }
 0x9a0   : > { %v1318_v23 = vadd.f32 %v1312_v29, %v1106_v18  ;;  %v2331_v31 = vpop.f32.mrb[21].mxu0 }
 0x9a1   : > { %v1315_v32 = vpop.f32.mrb[22].mxu0 }
 0x9a2   : > { %2592 = vtanh.f32 %v1318_v23  ;;  %v2332_v26 = vpop.f32.mrb[23].mxu0 }
 0x9ac   : > { %v3340_v30 = vpop.eup %2592 }
 0x9ad   : > { %v1322_v33 = vpack.c.bf16 %v3340_v30, %v3340_v30 }
 0x9af   : > { %2350 = vmatmul.mubr.bf16.vlgmr.msra.gmra.mrb[36].mxu1 %v1322_v33 }
 0x9b0   : > { %2374 = vmatpush3.bf16.msra.mxu1 %v3200_v40  ;;  %2389 = vmatprep.mubr.msk.bf16.mxu1 %vm2768_vm0, %v2767_v4 }
 0x9b1   : > { %2375 = vmatprep.subr.bf16.mxu1 %v2767_v4 }
 0x9b4   : > { %2376 = vmatpush3.bf16.msra.mxu1 %v3204_v41 }
 0x9b5   : > { %2377 = vmatprep.subr.bf16.mxu1 %v2767_v4 }
 0x9b8   : > { %2378 = vmatpush3.bf16.msra.mxu1 %v3208_v43 }
 0x9b9   : > { %2379 = vmatprep.subr.bf16.mxu1 %v2767_v4 }
 0x9bc   : > { %2380 = vmatpush3.bf16.msra.mxu1 %v3212_v44 }
 0x9bd   : > { %2381 = vmatprep.subr.bf16.mxu1 %v2767_v4 }
 0x9c0   : > { %2382 = vmatpush3.bf16.msra.mxu1 %v3216_v45 }
 0x9c1   : > { %2383 = vmatprep.subr.bf16.mxu1 %v2767_v4 }
 0x9c4   : > { %2384 = vmatpush3.bf16.msra.mxu1 %v3220_v47 }
 0x9c5   : > { %2385 = vmatprep.subr.bf16.mxu1 %v2767_v4 }
 0x9c8   : > { %2386 = vmatpush3.bf16.msra.mxu1 %v3224_v48 }
 0x9c9   : > { %2387 = vmatprep.subr.bf16.mxu1 %v2767_v4 }
 0x9cc   : > { %2388 = vmatpush3.bf16.msra.mxu1 %v3228_v49 }
 0x9cd   : > { %2413 = vmatprep.subr.bf16.mxu1 %v2767_v4 }
 0xa82   : > { %v1357_v35 = vpop.f32.mrb[36].mxu1 }
 0xa83   : > { %v1363_v36 = vadd.f32 %v1357_v35, %v1109_v34  ;;  %v2351_v37 = vpop.f32.mrb[37].mxu1 }
 0xa84   : > { %v1360_v38 = vpop.f32.mrb[38].mxu1 }
 0xa85   : > { %2594 = vtanh.f32 %v1363_v36  ;;  %v2352_v39 = vpop.f32.mrb[39].mxu1 }
 0xa8f   : > { %v3364_v50 = vpop.eup %2594 }
 0xa90   : > { %v1367_v51 = vpack.c.bf16 %v3364_v50, %v3364_v50  ;;  %v1556_v3 = vpack.c.bf16 %v3364_v50, %v3340_v30 }
 0xa92   : > { %2370 = vmatmul.mubr.bf16.vlgmr.msra.gmra.mrb[24].mxu0 %v1367_v51 }
 0xa93   : > { %2394 = vmatpush3.bf16.msra.mxu0 %v3200_v40  ;;  %2409 = vmatprep.mubr.msk.bf16.mxu0 %vm2768_vm0, %v2767_v4 }
 0xa94   : > { %2395 = vmatprep.subr.bf16.mxu0 %v2767_v4 }
 0xa97   : > { %2396 = vmatpush3.bf16.msra.mxu0 %v3204_v41 }
 0xa98   : > { %2397 = vmatprep.subr.bf16.mxu0 %v2767_v4 }
 0xa9b   : > { %2398 = vmatpush3.bf16.msra.mxu0 %v3208_v43 }
 0xa9c   : > { %2399 = vmatprep.subr.bf16.mxu0 %v2767_v4 }
 0xa9f   : > { %2400 = vmatpush3.bf16.msra.mxu0 %v3212_v44 }
 0xaa0   : > { %2401 = vmatprep.subr.bf16.mxu0 %v2767_v4 }
 0xaa3   : > { %2402 = vmatpush3.bf16.msra.mxu0 %v3216_v45 }
 0xaa4   : > { %2403 = vmatprep.subr.bf16.mxu0 %v2767_v4 }
 0xaa7   : > { %2404 = vmatpush3.bf16.msra.mxu0 %v3220_v47 }
 0xaa8   : > { %2405 = vmatprep.subr.bf16.mxu0 %v2767_v4 }
 0xaab   : > { %2406 = vmatpush3.bf16.msra.mxu0 %v3224_v48 }
 0xaac   : > { %2407 = vmatprep.subr.bf16.mxu0 %v2767_v4 }
 0xaaf   : > { %2408 = vmatpush3.bf16.msra.mxu0 %v3228_v49 }
 0xb65   : > { %v1402_v53 = vpop.f32.mrb[24].mxu0 }
 0xb66   : > { %v1408_v54 = vadd.f32 %v1402_v53, %v1114_v52  ;;  %v2371_v55 = vpop.f32.mrb[25].mxu0 }
 0xb67   : > { %v1405_v56 = vpop.f32.mrb[26].mxu0 }
 0xb68   : > { %2596 = vtanh.f32 %v1408_v54  ;;  %v2372_v42 = vpop.f32.mrb[27].mxu0 }
 0xb72   : > { %v2597_v57 = vpop.eup %2596 }
 0xb73   : > { %v1412_v58 = vpack.c.bf16 %v2597_v57, %v2597_v57 }
 0xb75   : > { %2390 = vmatmul.mubr.bf16.vlgmr.msra.gmra.mrb[40].mxu1 %v1412_v58 }
 0xb76   : > { %2414 = vmatpush3.bf16.msra.mxu1 %v3200_v40  ;;  %2429 = vmatprep.mubr.msk.bf16.mxu1 %vm2768_vm0, %v2767_v4  ;;  %v2564_v40 = vld [vmem:[%s3498_s5] sm:$0xff]  }
 0xb77   : > { %2415 = vmatprep.subr.bf16.mxu1 %v2767_v4  ;;  %2433 = vmatprep.subr.bf16.mxu0 %v2564_v40 }
 0xb7a   : > { %2416 = vmatpush3.bf16.msra.mxu1 %v3204_v41  ;;  %v1117_v41 = vadd.f32 %v3281_v6, %v3312_v22 }
 0xb7b   : > { %2417 = vmatprep.subr.bf16.mxu1 %v2767_v4 }
 0xb7e   : > { %2418 = vmatpush3.bf16.msra.mxu1 %v3208_v43 }
 0xb7f   : > { %2419 = vmatprep.subr.bf16.mxu1 %v2767_v4 }
 0xb82   : > { %2420 = vmatpush3.bf16.msra.mxu1 %v3212_v44 }
 0xb83   : > { %2421 = vmatprep.subr.bf16.mxu1 %v2767_v4 }
 0xb86   : > { %2422 = vmatpush3.bf16.msra.mxu1 %v3216_v45 }
 0xb87   : > { %2423 = vmatprep.subr.bf16.mxu1 %v2767_v4 }
 0xb8a   : > { %2424 = vmatpush3.bf16.msra.mxu1 %v3220_v47 }
 0xb8b   : > { %2425 = vmatprep.subr.bf16.mxu1 %v2767_v4 }
 0xb8e   : > { %2426 = vmatpush3.bf16.msra.mxu1 %v3224_v48 }
 0xb8f   : > { %2427 = vmatprep.subr.bf16.mxu1 %v2767_v4  ;;  %v2565_v4 = vld [vmem:[%s3498_s5 + $0x8] sm:$0xff]  }
 0xb92   : > { %2428 = vmatpush3.bf16.msra.mxu1 %v3228_v49  ;;  %v1555_v49 = vpack.c.bf16 %v3316_v15, %v3284_v14  ;;  %v1125_v15 = vadd.f32 %v3310_v21, %v3281_v6 }
 0xc48   : > { %v1447_v43 = vpop.f32.mrb[40].mxu1 }
 0xc49   : > { %v1453_v44 = vadd.f32 %v1447_v43, %v1117_v41  ;;  %v2391_v45 = vpop.f32.mrb[41].mxu1 }
 0xc4a   : > { %v1450_v47 = vpop.f32.mrb[42].mxu1 }
 0xc4b   : > { %2598 = vtanh.f32 %v1453_v44  ;;  %v2392_v59 = vpop.f32.mrb[43].mxu1 }
 0xc55   : > { %v2599_v60 = vpop.eup %2598 }
 0xc56   : > { %v1457_v48 = vpack.c.bf16 %v2599_v60, %v2599_v60  ;;  %v1557_v5 = vpack.c.bf16 %v2599_v60, %v2597_v57 }
 0xc58   : > { %2410 = vmatmul.mubr.bf16.vlgmr.msra.gmra.mrb[28].mxu0 %v1457_v48 }
 0xc59   : > { %2434 = vmatpush3.bf16.msra.mxu0 %v2564_v40  ;;  %2449 = vmatprep.mubr.bf16.mxu0 %v1555_v49 }
 0xc5a   : > { %2435 = vmatprep.subr.bf16.mxu0 %v2565_v4 }
 0xc5d   : > { %2436 = vmatpush3.bf16.msra.mxu0 %v2565_v4 }
 0xc5e   : > { %2437 = vmatprep.subr.bf16.mxu0 %v2566_v61 }
 0xc61   : > { %2438 = vmatpush3.bf16.msra.mxu0 %v2566_v61 }
 0xc62   : > { %2439 = vmatprep.subr.bf16.mxu0 %v2567_v62 }
 0xc65   : > { %2440 = vmatpush3.bf16.msra.mxu0 %v2567_v62 }
 0xc66   : > { %2441 = vmatprep.subr.bf16.mxu0 %v2568_v63 }
 0xc69   : > { %2442 = vmatpush3.bf16.msra.mxu0 %v2568_v63 }
 0xc6a   : > { %2443 = vmatprep.subr.bf16.mxu0 %v2569_v0 }
 0xc6d   : > { %2444 = vmatpush3.bf16.msra.mxu0 %v2569_v0 }
 0xc6e   : > { %2445 = vmatprep.subr.bf16.mxu0 %v2570_v1 }
 0xc71   : > { %2446 = vmatpush3.bf16.msra.mxu0 %v2570_v1 }
 0xc72   : > { %2447 = vmatprep.subr.bf16.mxu0 %v2571_v2 }
 0xc75   : > { %2448 = vmatpush3.bf16.msra.mxu0 %v2571_v2 }
 0xc78   : > { %2450 = vmatmul.mubr.bf16.vlgmr.msra.gmra.mrb[32].mxu0 %v1556_v3 }
 0xc79   : > { %2453 = vmatprep.mubr.bf16.mxu0 %v1557_v5 }
 0xd2b   : > { %v1492_v46 = vpop.f32.mrb[28].mxu0 }
 0xd2c   : > { %v1498_v8 = vadd.f32 %v1492_v46, %v1122_v7  ;;  %v2411_v9 = vpop.f32.mrb[29].mxu0 }
 0xd2d   : > { %v1495_v11 = vpop.f32.mrb[30].mxu0 }
 0xd2e   : > { %2600 = vtanh.f32 %v1498_v8  ;;  %v2412_v13 = vpop.f32.mrb[31].mxu0 }
 0xd38   : > { %v2601_v14 = vpop.eup %2600 }
 0xd39   : > { %v1502_v17 = vpack.c.bf16 %v2601_v14, %v2601_v14 }
 0xd3b   : > { %2430 = vmatmul.mubr.bf16.vlgmr.msra.gmra.mrb[44].mxu1 %v1502_v17 }
 0xd4b   : > { %v2451_v22 = vpop.f32.mrb[32].mxu0 }
 0xd4c   : > { %v1673_v19 = vadd.f32 %v2451_v22, %v1871_v20  ;;  %v1664_v24 = vpop.f32.mrb[33].mxu0 }
 0xd4d   : > { %v1665_v25 = vadd.f32 %v1871_v20, %v1664_v24  ;;  %v2452_v27 = vpop.f32.mrb[34].mxu0 }
 0xd4e   : > { %1698 = vst.msk [vmem:[%s2981_s30 + $0x10] sm:$0xff] %vm1695_vm1, %v1673_v19  ;;  %v1676_v28 = vadd.f32 %v2452_v27, %v1871_v20  ;;  %v1667_v10 = vpop.f32.mrb[35].mxu0 }
 0xd4f   : > { %1696 = vst.msk [vmem:[%s2981_s30] sm:$0xff] %vm1695_vm1, %v1665_v25  ;;  %v1668_v12 = vadd.f32 %v1871_v20, %v1667_v10 }
 0xd50   : > { %1699 = vst.msk [vmem:[%s2981_s30 + $0x18] sm:$0xff] %vm1695_vm1, %v1676_v28 }
 0xd51   : > { %1697 = vst.msk [vmem:[%s2981_s30 + $0x8] sm:$0xff] %vm1695_vm1, %v1668_v12 }
 0xe0e   : > { %v1537_v16 = vpop.f32.mrb[44].mxu1 }
 0xe0f   : > { %v1543_v18 = vadd.f32 %v1537_v16, %v1125_v15  ;;  %v2431_v29 = vpop.f32.mrb[45].mxu1 }
 0xe10   : > { %v1540_v23 = vpop.f32.mrb[46].mxu1 }
 0xe11   : > { %2602 = vtanh.f32 %v1543_v18  ;;  %v2432_v31 = vpop.f32.mrb[47].mxu1 }
 0xe1b   : > { %v2603_v32 = vpop.eup %2602 }
 0xe1c   : > { %1546 = vst [vmem:[#allocation2 + $0x8] sm:$0xff] %v2603_v32  ;;  %v1558_v26 = vpack.c.bf16 %v2603_v32, %v2601_v14  ;;  %1707 = vst [vmem:[#allocation11 + $0x8] sm:$0xff] %v2603_v32 }
 0xe1e   : > { %2454 = vmatmul.mubr.bf16.gmra.mrb[36].mxu0 %v1558_v26 }
 0xe1f   : > { %2703 = shalt.err (!%p2700_p2)
}
 0xe20   : > { %s2704_s26 = scalar_lea.hbm %s3501_s8, 256 }
 0xe21   : > { %p2705_p11 = scmp.ne.s32.totalorder %s3501_s8, %s2704_s26  ;;  %p2710_p8 = scmp.lt.u32.totalorder %s2704_s26, %s3501_s8 }
 0xe23   : > { %p2706_p13 = pnand %p2705_p11, %p2487_p9 }
 0xe25   : > { %p2707_p3 = pneg %p2706_p13 }
 0xe27   : > { %p2712_p7 = pnand %p2710_p8, %p2707_p3 }
 0xe29   : > { %2715 = shalt.err (!%p2712_p7)
}
 0xe2a   : > { %s2770_s20 = smov 128   ;;  %s2771_s21 = smov 8  }
 0xe2b   : > { %2468 = dma.vmem_to_hbm [thread:$0]  (%p2487_p9), %s1724_s14, 256, %s3501_s8, [#allocation7], %s2770_s20, %s2770_s20, %s2771_s21  }
 0xef1   : > { %v2455_v6 = vpop.f32.mrb[36].mxu0 }
 0xef2   : > { %v1689_v21 = vadd.f32 %v2455_v6, %v1871_v20  ;;  %v1680_v30 = vpop.f32.mrb[37].mxu0 }
 0xef3   : > { %v1681_v33 = vadd.f32 %v1871_v20, %v1680_v30  ;;  %v2456_v34 = vpop.f32.mrb[38].mxu0 }
 0xef4   : > { %1702 = vst.msk [vmem:[%s2981_s30 + $0x30] sm:$0xff] %vm1695_vm1, %v1689_v21  ;;  %v1692_v35 = vadd.f32 %v2456_v34, %v1871_v20  ;;  %v1683_v36 = vpop.f32.mrb[39].mxu0 }
 0xef5   : > { %1700 = vst.msk [vmem:[%s2981_s30 + $0x20] sm:$0xff] %vm1695_vm1, %v1681_v33  ;;  %v1684_v37 = vadd.f32 %v1871_v20, %v1683_v36 }
 0xef6   : > { %1703 = vst.msk [vmem:[%s2981_s30 + $0x38] sm:$0xff] %vm1695_vm1, %v1692_v35 }
 0xef7   : > { %1701 = vst.msk [vmem:[%s2981_s30 + $0x28] sm:$0xff] %vm1695_vm1, %v1684_v37 }
 0xef8   : > { %2741 = dma.done.wait (%p2487_p9), [#allocation7], 256  }
 0xef9   : > { %2743 = vsyncadd (%p2487_p9), [#allocation7], 4294967040 }
 0xefa PF: > { %s3514_s23 = smov %s2911_s27  ;;  %p21_p10 = scmp.ge.s32.totalorder %s2911_s27, 4  }
 0xefb   : > { %s3515_s27 = smov %s2750_s28  ;;  %s3516_s28 = smov %s2754_s29 }
 0xefc   : > { %s3517_s29 = smov %s2922_s17  ;;  %s3518_s30 = smov %s3514_s23 }
 0xefd   :  { %23 = sbr.rel (!%p21_p10) target bundleno = 5 (0x5), region = 127 }
 0xf04   :  { %1747 = vsyncpa [#allocation6], 1 }
 0xf05   :  { %1749 = vsyncpa [#allocation6 + $0x1], 1 }
 0xf06   :  { %1750 = vsyncpa [#allocation9], 1 }
 0xf07   :  { %1751 = vsyncpa [#allocation7], 1 }
 0xf08   :  { %1753 = vsyncpa [#allocation7 + $0x1], 1 }

</bundles_post_ra>
